<compile_context>
chip_gen: v7x
topology: tpu7x:2x2x1
jax: 0.10.0
libtpu: 0.0.40
codegen_flags: <defaults>
</compile_context>

<pallas_src>
import jax
import jax.numpy as jnp
from jax import lax
from jax.experimental import pallas as pl
from jax.experimental.pallas import tpu as pltpu


def _conv3x3_relu_flat(t, w_ref, *, img_w, length):
    """3x3 VALID conv + bias + ReLU in the flat-spatial layout, via im2col on the MXU.

    t:      (cin, length) f32; channels on sublanes, flattened (b, y, x) on lanes.
            Positions outside the caller's valid window may hold garbage.
    w_ref:  (9*cin + 1, cout) bf16 ref; row (ky*3 + kx)*cin + ci holds
            w[co, ci, ky, kx]; the last row holds the bias.
    returns (cout, length) f32; the valid window shrinks by 2 in y and x.
    """
    cin = t.shape[0]
    taps = []
    for ky in range(3):
        for kx in range(3):
            off = ky * img_w + kx
            # value at flat position p must come from position p + off:
            # jnp.roll(t, -off) == pltpu.roll(t, length - off).
            tap = t if off == 0 else pltpu.roll(t, length - off, axis=1)
            taps.append(tap.astype(jnp.bfloat16))
    taps.append(jnp.ones((1, length), jnp.bfloat16))       # ones row -> folded bias
    p = jnp.concatenate(taps, axis=0)                       # (9*cin + 1, length) bf16
    y = lax.dot_general(w_ref[...], p, (((0,), (0,)), ((), ())),
                        preferred_element_type=jnp.float32)  # (cout, length) f32
    return jnp.maximum(y, 0.0)


def _pick_bt(batch, hw, per_elem_bytes, budget_bytes):
    """Largest batch-per-step keeping grid >= 2, fitting the VMEM budget and
    keeping the lane-axis blocks 128-aligned (or full)."""
    best = None
    for d in range(1, batch + 1):
        if batch % d:
            continue
        if batch >= 2 and (batch // d) < 2:
            continue                      # >= 2 grid steps: pipelining + 2nd v7x core
        if d * per_elem_bytes > budget_bytes:
            continue
        if (d * hw) % 128 != 0 and d != batch:
            continue                      # lane blocks must be 128-aligned (or full)
        best = d
    if best is None:
        best = batch if (hw % 128) != 0 else 1
    return best


def bad_graph_transformer_down(x, params, *, vmem_budget_bytes=8 * 1024 * 1024):
    """x: (B, Cin, H, W) f32.  params: 4 tuples of (OIHW conv weight, bias)."""
    B, Cin, H, W = map(int, x.shape)
    Cout = int(params[0][0].shape[0])
    HW = H * W
    Hout, Wout = H - 8, W - 8                       # 4 VALID 3x3 convs
    h_mid, w_mid = H - 4, W - 4                     # valid extent at the graph stage
    assert Hout > 0 and Wout > 0, (H, W)

    # Rough per-batch-element working set (f32 activations, bf16 patches, I/O blocks).
    patch_rows = 9 * max(Cin, Cout) + 1
    per_elem = (2 * Cin * HW * 4            # double-buffered input block
                + 2 * Cout * HW * 4         # double-buffered output block
                + 6 * Cout * HW * 4         # live f32 activations / graph-stage temps
                + 2 * patch_rows * HW * 2)  # bf16 im2col patches (+ headroom)
    bt = _pick_bt(B, HW, per_elem, vmem_budget_bytes)
    L = bt * HW

    # Input re-layout (outside the kernel): channels on sublanes, (b, y, x) on lanes.
    x_flat = jnp.transpose(x, (1, 0, 2, 3)).reshape(Cin, B * HW).astype(jnp.float32)

    # Weight repack (outside the kernel):
    #   OIHW (cout, cin, 3, 3) -> (ky, kx, ci, co) -> (9*cin, cout); bias appended
    #   as the last row so the ones row in the patches applies it; cast to bf16.
    def pack(w, b):
        cout_i, cin_i = int(w.shape[0]), int(w.shape[1])
        assert cout_i == Cout, "all convs in this module share out_channels"
        wk = jnp.transpose(w, (2, 3, 1, 0)).reshape(9 * cin_i, cout_i)
        wk = jnp.concatenate([wk, b.reshape(1, cout_i)], axis=0)
        return wk.astype(jnp.bfloat16)

    packed = [pack(w, b) for (w, b) in params]

    def kernel(x_ref, we1_ref, we2_ref, wd1_ref, wd2_ref, o_ref):
        # Encoding convs (un-batched im2col matmuls on the MXU, flat-spatial layout).
        a = _conv3x3_relu_flat(x_ref[...], we1_ref, img_w=W, length=L)
        a = _conv3x3_relu_flat(a, we2_ref, img_w=W, length=L)    # (Cout, L) f32

        # Graph stage: per-(batch, channel)  A^T A  then  A @ (A^T A), in f32.
        # Zero everything outside the (h_mid, w_mid) valid window so garbage
        # cannot pollute the contraction over rows.
        a3 = a.reshape(Cout * bt, H, W)
        yi = lax.broadcasted_iota(jnp.int32, a3.shape, 1)
        xi = lax.broadcasted_iota(jnp.int32, a3.shape, 2)
        a3 = jnp.where((yi < h_mid) & (xi < w_mid), a3, 0.0)
        sq = jnp.einsum('kyx,kyv->kxv', a3, a3,
                        preferred_element_type=jnp.float32)       # A^T @ A
        m3 = jnp.einsum('kyx,kxv->kyv', a3, sq,
                        preferred_element_type=jnp.float32)       # A @ (A^T A)
        m = m3.reshape(Cout, L)

        # Decoding convs.
        y = _conv3x3_relu_flat(m, wd1_ref, img_w=W, length=L)
        y = _conv3x3_relu_flat(y, wd2_ref, img_w=W, length=L)     # (Cout, L) f32

        # Lane-dense store of the padded block; the wrapper crops the valid window.
        o_ref[...] = y.astype(o_ref.dtype)

    in_specs = [pl.BlockSpec((Cin, L), lambda b: (0, b))]
    in_specs += [pl.BlockSpec(p.shape, lambda b: (0, 0)) for p in packed]

    out_flat = pl.pallas_call(
        kernel,
        out_shape=jax.ShapeDtypeStruct((Cout, B * HW), jnp.float32),
        grid_spec=pltpu.PrefetchScalarGridSpec(
            num_scalar_prefetch=0,
            grid=(B // bt,),
            in_specs=in_specs,
            out_specs=pl.BlockSpec((Cout, L), lambda b: (0, b)),
        ),
        compiler_params=pltpu.CompilerParams(
            dimension_semantics=("parallel",),
            vmem_limit_bytes=32 * 1024 * 1024),
    )(x_flat, *packed)

    # Crop the valid window and restore NCHW (layout plumbing outside the kernel).
    out = out_flat.reshape(Cout, B, H, W).transpose(1, 0, 2, 3)
    return out[:, :, :Hout, :Wout]


def _reference(x, params):
    """Pure-JAX (f32) reference matching the PyTorch forward."""
    def conv_relu(t, w, b):
        y = lax.conv_general_dilated(
            t, w, window_strides=(1, 1), padding='VALID',
            dimension_numbers=('NCHW', 'OIHW', 'NCHW'))
        return jax.nn.relu(y + b[None, :, None, None])

    (we1, be1), (we2, be2), (wd1, bd1), (wd2, bd2) = params
    a = conv_relu(conv_relu(x, we1, be1), we2, be2)
    sq = jnp.einsum('bchw,bchv->bcwv', a, a)                 # a.transpose(2,3) @ a
    m = jnp.einsum('bchw,bcwv->bchv', a, sq)                 # a @ sq
    return conv_relu(conv_relu(m, wd1, bd1), wd2, bd2)


if __name__ == "__main__":
    B, Cin, Cout, H, W = 2, 4, 8, 16, 16

    key = jax.random.PRNGKey(0)
    keys = jax.random.split(key, 5)
    x = jax.random.normal(keys[0], (B, Cin, H, W), dtype=jnp.float32)

    def init_conv(k, cin, cout):
        kw, kb = jax.random.split(k)
        w = 0.2 * jax.random.normal(kw, (cout, cin, 3, 3), dtype=jnp.float32)
        b = 0.1 * jax.random.normal(kb, (cout,), dtype=jnp.float32)
        return w, b

    params = (
        init_conv(keys[1], Cin, Cout),   # encoding conv 1
        init_conv(keys[2], Cout, Cout),  # encoding conv 2
        init_conv(keys[3], Cout, Cout),  # decoding conv 1
        init_conv(keys[4], Cout, Cout),  # decoding conv 2
    )

    out = jax.block_until_ready(bad_graph_transformer_down(x, params))
    assert out.shape == (B, Cout, H - 8, W - 8), out.shape

    ref = jax.block_until_ready(_reference(x, params))
    # Conv layers use bf16 MXU operands (f32 accumulate); the graph stage is f32.
    max_err = float(jnp.max(jnp.abs(out - ref)))
    scale = max(1.0, float(jnp.max(jnp.abs(ref))))
    if max_err > 3e-2 * scale:
        raise AssertionError(
            f"kernel mismatch vs reference: max abs err={max_err}, ref scale={scale}")

    print("KERNEL_OK")
</pallas_src>

<mosaic_0001>
module attributes {stable_mosaic.version = 11 : i64} {
  func.func @kernel(%arg0: i32, %arg1: memref<4x256xf32, #tpu.memory_space<vmem>>, %arg2: memref<37x8xbf16, #tpu.memory_space<vmem>>, %arg3: memref<73x8xbf16, #tpu.memory_space<vmem>>, %arg4: memref<73x8xbf16, #tpu.memory_space<vmem>>, %arg5: memref<73x8xbf16, #tpu.memory_space<vmem>>, %arg6: memref<8x256xf32, #tpu.memory_space<vmem>>) attributes {dimension_semantics = [#tpu.dimension_semantics<parallel>], iteration_bounds = array<i64: 2>, scalar_prefetch = 0 : i64, scratch_operands = 0 : i64, tpu.core_type = #tpu.core_type<tc>, window_params = [{transform_indices = @transform_0, window_bounds = array<i64: 4, 256>}, {pipeline_mode = #tpu.pipeline_mode<synchronous>, transform_indices = @transform_1, window_bounds = array<i64: 37, 8>}, {pipeline_mode = #tpu.pipeline_mode<synchronous>, transform_indices = @transform_2, window_bounds = array<i64: 73, 8>}, {pipeline_mode = #tpu.pipeline_mode<synchronous>, transform_indices = @transform_3, window_bounds = array<i64: 73, 8>}, {pipeline_mode = #tpu.pipeline_mode<synchronous>, transform_indices = @transform_4, window_bounds = array<i64: 73, 8>}, {transform_indices = @transform_5, window_bounds = array<i64: 8, 256>}]} {
    %c0 = arith.constant 0 : index
    %c0_0 = arith.constant 0 : index
    %0 = vector.load %arg1[%c0, %c0_0] : memref<4x256xf32, #tpu.memory_space<vmem>>, vector<4x256xf32>
    %1 = arith.truncf %0 : vector<4x256xf32> to vector<4x256xbf16>
    %c255_i32 = arith.constant 255 : i32
    %2 = tpu.dynamic_rotate %0 by %c255_i32 dim 1 : vector<4x256xf32>, i32 -> vector<4x256xf32>
    %3 = arith.truncf %2 : vector<4x256xf32> to vector<4x256xbf16>
    %c254_i32 = arith.constant 254 : i32
    %4 = tpu.dynamic_rotate %0 by %c254_i32 dim 1 : vector<4x256xf32>, i32 -> vector<4x256xf32>
    %5 = arith.truncf %4 : vector<4x256xf32> to vector<4x256xbf16>
    %c240_i32 = arith.constant 240 : i32
    %6 = tpu.dynamic_rotate %0 by %c240_i32 dim 1 : vector<4x256xf32>, i32 -> vector<4x256xf32>
    %7 = arith.truncf %6 : vector<4x256xf32> to vector<4x256xbf16>
    %c239_i32 = arith.constant 239 : i32
    %8 = tpu.dynamic_rotate %0 by %c239_i32 dim 1 : vector<4x256xf32>, i32 -> vector<4x256xf32>
    %9 = arith.truncf %8 : vector<4x256xf32> to vector<4x256xbf16>
    %c238_i32 = arith.constant 238 : i32
    %10 = tpu.dynamic_rotate %0 by %c238_i32 dim 1 : vector<4x256xf32>, i32 -> vector<4x256xf32>
    %11 = arith.truncf %10 : vector<4x256xf32> to vector<4x256xbf16>
    %c224_i32 = arith.constant 224 : i32
    %12 = tpu.dynamic_rotate %0 by %c224_i32 dim 1 : vector<4x256xf32>, i32 -> vector<4x256xf32>
    %13 = arith.truncf %12 : vector<4x256xf32> to vector<4x256xbf16>
    %c223_i32 = arith.constant 223 : i32
    %14 = tpu.dynamic_rotate %0 by %c223_i32 dim 1 : vector<4x256xf32>, i32 -> vector<4x256xf32>
    %15 = arith.truncf %14 : vector<4x256xf32> to vector<4x256xbf16>
    %c222_i32 = arith.constant 222 : i32
    %16 = tpu.dynamic_rotate %0 by %c222_i32 dim 1 : vector<4x256xf32>, i32 -> vector<4x256xf32>
    %17 = arith.truncf %16 : vector<4x256xf32> to vector<4x256xbf16>
    %cst = arith.constant 1.000000e+00 : bf16
    %18 = vector.broadcast %cst : bf16 to vector<1x256xbf16>
    %19 = tpu.concatenate %1, %3, %5, %7, %9, %11, %13, %15, %17, %18 in 0 : vector<4x256xbf16>, vector<4x256xbf16>, vector<4x256xbf16>, vector<4x256xbf16>, vector<4x256xbf16>, vector<4x256xbf16>, vector<4x256xbf16>, vector<4x256xbf16>, vector<4x256xbf16>, vector<1x256xbf16> -> vector<37x256xbf16>
    %c0_1 = arith.constant 0 : index
    %c0_2 = arith.constant 0 : index
    %20 = vector.load %arg2[%c0_1, %c0_2] : memref<37x8xbf16, #tpu.memory_space<vmem>>, vector<37x8xbf16>
    %cst_3 = arith.constant dense<0.000000e+00> : vector<8x256xf32>
    %21 = tpu.matmul %20, %19, %cst_3 {dimension_numbers = #tpu.dot_dimension_numbers<[0], [0], [1], [1], [0, 1, 1, 1], [], []>} : vector<37x8xbf16>, vector<37x256xbf16>, vector<8x256xf32> -> vector<8x256xf32>
    %cst_4 = arith.constant 0.000000e+00 : f32
    %22 = vector.broadcast %cst_4 : f32 to vector<8x256xf32>
    %23 = arith.maximumf %21, %22 : vector<8x256xf32>
    %24 = arith.truncf %23 : vector<8x256xf32> to vector<8x256xbf16>
    %c255_i32_5 = arith.constant 255 : i32
    %25 = tpu.dynamic_rotate %23 by %c255_i32_5 dim 1 : vector<8x256xf32>, i32 -> vector<8x256xf32>
    %26 = arith.truncf %25 : vector<8x256xf32> to vector<8x256xbf16>
    %c254_i32_6 = arith.constant 254 : i32
    %27 = tpu.dynamic_rotate %23 by %c254_i32_6 dim 1 : vector<8x256xf32>, i32 -> vector<8x256xf32>
    %28 = arith.truncf %27 : vector<8x256xf32> to vector<8x256xbf16>
    %c240_i32_7 = arith.constant 240 : i32
    %29 = tpu.dynamic_rotate %23 by %c240_i32_7 dim 1 : vector<8x256xf32>, i32 -> vector<8x256xf32>
    %30 = arith.truncf %29 : vector<8x256xf32> to vector<8x256xbf16>
    %c239_i32_8 = arith.constant 239 : i32
    %31 = tpu.dynamic_rotate %23 by %c239_i32_8 dim 1 : vector<8x256xf32>, i32 -> vector<8x256xf32>
    %32 = arith.truncf %31 : vector<8x256xf32> to vector<8x256xbf16>
    %c238_i32_9 = arith.constant 238 : i32
    %33 = tpu.dynamic_rotate %23 by %c238_i32_9 dim 1 : vector<8x256xf32>, i32 -> vector<8x256xf32>
    %34 = arith.truncf %33 : vector<8x256xf32> to vector<8x256xbf16>
    %c224_i32_10 = arith.constant 224 : i32
    %35 = tpu.dynamic_rotate %23 by %c224_i32_10 dim 1 : vector<8x256xf32>, i32 -> vector<8x256xf32>
    %36 = arith.truncf %35 : vector<8x256xf32> to vector<8x256xbf16>
    %c223_i32_11 = arith.constant 223 : i32
    %37 = tpu.dynamic_rotate %23 by %c223_i32_11 dim 1 : vector<8x256xf32>, i32 -> vector<8x256xf32>
    %38 = arith.truncf %37 : vector<8x256xf32> to vector<8x256xbf16>
    %c222_i32_12 = arith.constant 222 : i32
    %39 = tpu.dynamic_rotate %23 by %c222_i32_12 dim 1 : vector<8x256xf32>, i32 -> vector<8x256xf32>
    %40 = arith.truncf %39 : vector<8x256xf32> to vector<8x256xbf16>
    %cst_13 = arith.constant 1.000000e+00 : bf16
    %41 = vector.broadcast %cst_13 : bf16 to vector<1x256xbf16>
    %42 = tpu.concatenate %24, %26, %28, %30, %32, %34, %36, %38, %40, %41 in 0 : vector<8x256xbf16>, vector<8x256xbf16>, vector<8x256xbf16>, vector<8x256xbf16>, vector<8x256xbf16>, vector<8x256xbf16>, vector<8x256xbf16>, vector<8x256xbf16>, vector<8x256xbf16>, vector<1x256xbf16> -> vector<73x256xbf16>
    %c0_14 = arith.constant 0 : index
    %c0_15 = arith.constant 0 : index
    %43 = vector.load %arg3[%c0_14, %c0_15] : memref<73x8xbf16, #tpu.memory_space<vmem>>, vector<73x8xbf16>
    %cst_16 = arith.constant dense<0.000000e+00> : vector<8x256xf32>
    %44 = tpu.matmul %43, %42, %cst_16 {dimension_numbers = #tpu.dot_dimension_numbers<[0], [0], [1], [1], [0, 1, 1, 1], [], []>} : vector<73x8xbf16>, vector<73x256xbf16>, vector<8x256xf32> -> vector<8x256xf32>
    %cst_17 = arith.constant 0.000000e+00 : f32
    %45 = vector.broadcast %cst_17 : f32 to vector<8x256xf32>
    %46 = arith.maximumf %44, %45 : vector<8x256xf32>
    %47 = vector.shape_cast %46 : vector<8x256xf32> to vector<8x16x16xf32>
    %48 = tpu.iota {dimensions = array<i32: 1>} : vector<8x16x16xi32>
    %49 = tpu.iota {dimensions = array<i32: 2>} : vector<8x16x16xi32>
    %c12_i32 = arith.constant 12 : i32
    %50 = vector.broadcast %c12_i32 : i32 to vector<8x16x16xi32>
    %51 = arith.cmpi slt, %48, %50 : vector<8x16x16xi32>
    %c12_i32_18 = arith.constant 12 : i32
    %52 = vector.broadcast %c12_i32_18 : i32 to vector<8x16x16xi32>
    %53 = arith.cmpi slt, %49, %52 : vector<8x16x16xi32>
    %54 = arith.andi %51, %53 : vector<8x16x16xi1>
    %cst_19 = arith.constant 0.000000e+00 : f32
    %55 = vector.broadcast %cst_19 : f32 to vector<8x16x16xf32>
    %56 = arith.select %54, %47, %55 : vector<8x16x16xi1>, vector<8x16x16xf32>
    "tpu.trace_start"() <{level = 10 : i32, message = "kyx,kyv->kxv"}> : () -> ()
    %cst_20 = arith.constant dense<0.000000e+00> : vector<8x16x16xf32>
    %57 = tpu.matmul %56, %56, %cst_20 {dimension_numbers = #tpu.dot_dimension_numbers<[1], [1], [2], [2], [0, 0, 0, 2, 1, 2], [0], [0]>} : vector<8x16x16xf32>, vector<8x16x16xf32>, vector<8x16x16xf32> -> vector<8x16x16xf32>
    "tpu.trace_stop"() : () -> ()
    "tpu.trace_start"() <{level = 10 : i32, message = "kyx,kxv->kyv"}> : () -> ()
    %cst_21 = arith.constant dense<0.000000e+00> : vector<8x16x16xf32>
    %58 = tpu.matmul %56, %57, %cst_21 {dimension_numbers = #tpu.dot_dimension_numbers<[2], [1], [1], [2], [0, 0, 0, 1, 1, 2], [0], [0]>} : vector<8x16x16xf32>, vector<8x16x16xf32>, vector<8x16x16xf32> -> vector<8x16x16xf32>
    "tpu.trace_stop"() : () -> ()
    %59 = vector.shape_cast %58 : vector<8x16x16xf32> to vector<8x256xf32>
    %60 = arith.truncf %59 : vector<8x256xf32> to vector<8x256xbf16>
    %c255_i32_22 = arith.constant 255 : i32
    %61 = tpu.dynamic_rotate %59 by %c255_i32_22 dim 1 : vector<8x256xf32>, i32 -> vector<8x256xf32>
    %62 = arith.truncf %61 : vector<8x256xf32> to vector<8x256xbf16>
    %c254_i32_23 = arith.constant 254 : i32
    %63 = tpu.dynamic_rotate %59 by %c254_i32_23 dim 1 : vector<8x256xf32>, i32 -> vector<8x256xf32>
    %64 = arith.truncf %63 : vector<8x256xf32> to vector<8x256xbf16>
    %c240_i32_24 = arith.constant 240 : i32
    %65 = tpu.dynamic_rotate %59 by %c240_i32_24 dim 1 : vector<8x256xf32>, i32 -> vector<8x256xf32>
    %66 = arith.truncf %65 : vector<8x256xf32> to vector<8x256xbf16>
    %c239_i32_25 = arith.constant 239 : i32
    %67 = tpu.dynamic_rotate %59 by %c239_i32_25 dim 1 : vector<8x256xf32>, i32 -> vector<8x256xf32>
    %68 = arith.truncf %67 : vector<8x256xf32> to vector<8x256xbf16>
    %c238_i32_26 = arith.constant 238 : i32
    %69 = tpu.dynamic_rotate %59 by %c238_i32_26 dim 1 : vector<8x256xf32>, i32 -> vector<8x256xf32>
    %70 = arith.truncf %69 : vector<8x256xf32> to vector<8x256xbf16>
    %c224_i32_27 = arith.constant 224 : i32
    %71 = tpu.dynamic_rotate %59 by %c224_i32_27 dim 1 : vector<8x256xf32>, i32 -> vector<8x256xf32>
    %72 = arith.truncf %71 : vector<8x256xf32> to vector<8x256xbf16>
    %c223_i32_28 = arith.constant 223 : i32
    %73 = tpu.dynamic_rotate %59 by %c223_i32_28 dim 1 : vector<8x256xf32>, i32 -> vector<8x256xf32>
    %74 = arith.truncf %73 : vector<8x256xf32> to vector<8x256xbf16>
    %c222_i32_29 = arith.constant 222 : i32
    %75 = tpu.dynamic_rotate %59 by %c222_i32_29 dim 1 : vector<8x256xf32>, i32 -> vector<8x256xf32>
    %76 = arith.truncf %75 : vector<8x256xf32> to vector<8x256xbf16>
    %cst_30 = arith.constant 1.000000e+00 : bf16
    %77 = vector.broadcast %cst_30 : bf16 to vector<1x256xbf16>
    %78 = tpu.concatenate %60, %62, %64, %66, %68, %70, %72, %74, %76, %77 in 0 : vector<8x256xbf16>, vector<8x256xbf16>, vector<8x256xbf16>, vector<8x256xbf16>, vector<8x256xbf16>, vector<8x256xbf16>, vector<8x256xbf16>, vector<8x256xbf16>, vector<8x256xbf16>, vector<1x256xbf16> -> vector<73x256xbf16>
    %c0_31 = arith.constant 0 : index
    %c0_32 = arith.constant 0 : index
    %79 = vector.load %arg4[%c0_31, %c0_32] : memref<73x8xbf16, #tpu.memory_space<vmem>>, vector<73x8xbf16>
    %cst_33 = arith.constant dense<0.000000e+00> : vector<8x256xf32>
    %80 = tpu.matmul %79, %78, %cst_33 {dimension_numbers = #tpu.dot_dimension_numbers<[0], [0], [1], [1], [0, 1, 1, 1], [], []>} : vector<73x8xbf16>, vector<73x256xbf16>, vector<8x256xf32> -> vector<8x256xf32>
    %cst_34 = arith.constant 0.000000e+00 : f32
    %81 = vector.broadcast %cst_34 : f32 to vector<8x256xf32>
    %82 = arith.maximumf %80, %81 : vector<8x256xf32>
    %83 = arith.truncf %82 : vector<8x256xf32> to vector<8x256xbf16>
    %c255_i32_35 = arith.constant 255 : i32
    %84 = tpu.dynamic_rotate %82 by %c255_i32_35 dim 1 : vector<8x256xf32>, i32 -> vector<8x256xf32>
    %85 = arith.truncf %84 : vector<8x256xf32> to vector<8x256xbf16>
    %c254_i32_36 = arith.constant 254 : i32
    %86 = tpu.dynamic_rotate %82 by %c254_i32_36 dim 1 : vector<8x256xf32>, i32 -> vector<8x256xf32>
    %87 = arith.truncf %86 : vector<8x256xf32> to vector<8x256xbf16>
    %c240_i32_37 = arith.constant 240 : i32
    %88 = tpu.dynamic_rotate %82 by %c240_i32_37 dim 1 : vector<8x256xf32>, i32 -> vector<8x256xf32>
    %89 = arith.truncf %88 : vector<8x256xf32> to vector<8x256xbf16>
    %c239_i32_38 = arith.constant 239 : i32
    %90 = tpu.dynamic_rotate %82 by %c239_i32_38 dim 1 : vector<8x256xf32>, i32 -> vector<8x256xf32>
    %91 = arith.truncf %90 : vector<8x256xf32> to vector<8x256xbf16>
    %c238_i32_39 = arith.constant 238 : i32
    %92 = tpu.dynamic_rotate %82 by %c238_i32_39 dim 1 : vector<8x256xf32>, i32 -> vector<8x256xf32>
    %93 = arith.truncf %92 : vector<8x256xf32> to vector<8x256xbf16>
    %c224_i32_40 = arith.constant 224 : i32
    %94 = tpu.dynamic_rotate %82 by %c224_i32_40 dim 1 : vector<8x256xf32>, i32 -> vector<8x256xf32>
    %95 = arith.truncf %94 : vector<8x256xf32> to vector<8x256xbf16>
    %c223_i32_41 = arith.constant 223 : i32
    %96 = tpu.dynamic_rotate %82 by %c223_i32_41 dim 1 : vector<8x256xf32>, i32 -> vector<8x256xf32>
    %97 = arith.truncf %96 : vector<8x256xf32> to vector<8x256xbf16>
    %c222_i32_42 = arith.constant 222 : i32
    %98 = tpu.dynamic_rotate %82 by %c222_i32_42 dim 1 : vector<8x256xf32>, i32 -> vector<8x256xf32>
    %99 = arith.truncf %98 : vector<8x256xf32> to vector<8x256xbf16>
    %cst_43 = arith.constant 1.000000e+00 : bf16
    %100 = vector.broadcast %cst_43 : bf16 to vector<1x256xbf16>
    %101 = tpu.concatenate %83, %85, %87, %89, %91, %93, %95, %97, %99, %100 in 0 : vector<8x256xbf16>, vector<8x256xbf16>, vector<8x256xbf16>, vector<8x256xbf16>, vector<8x256xbf16>, vector<8x256xbf16>, vector<8x256xbf16>, vector<8x256xbf16>, vector<8x256xbf16>, vector<1x256xbf16> -> vector<73x256xbf16>
    %c0_44 = arith.constant 0 : index
    %c0_45 = arith.constant 0 : index
    %102 = vector.load %arg5[%c0_44, %c0_45] : memref<73x8xbf16, #tpu.memory_space<vmem>>, vector<73x8xbf16>
    %cst_46 = arith.constant dense<0.000000e+00> : vector<8x256xf32>
    %103 = tpu.matmul %102, %101, %cst_46 {dimension_numbers = #tpu.dot_dimension_numbers<[0], [0], [1], [1], [0, 1, 1, 1], [], []>} : vector<73x8xbf16>, vector<73x256xbf16>, vector<8x256xf32> -> vector<8x256xf32>
    %cst_47 = arith.constant 0.000000e+00 : f32
    %104 = vector.broadcast %cst_47 : f32 to vector<8x256xf32>
    %105 = arith.maximumf %103, %104 : vector<8x256xf32>
    %c0_48 = arith.constant 0 : index
    %c0_49 = arith.constant 0 : index
    %106 = vector.load %arg6[%c0_48, %c0_49] : memref<8x256xf32, #tpu.memory_space<vmem>>, vector<8x256xf32>
    tpu.vector_store %arg6[%c0_48, %c0_49], %105 {strides = array<i32>} : memref<8x256xf32, #tpu.memory_space<vmem>>, vector<8x256xf32>,
    return
  }
  func.func @transform_0(%arg0: i32) -> (i32, i32) {
    %c0_i32 = arith.constant 0 : i32
    %c0_i32_0 = arith.constant 0 : i32
    return %c0_i32, %arg0 : i32, i32
  }
  func.func @transform_1(%arg0: i32) -> (i32, i32) {
    %c0_i32 = arith.constant 0 : i32
    %c0_i32_0 = arith.constant 0 : i32
    %c0_i32_1 = arith.constant 0 : i32
    return %c0_i32, %c0_i32_0 : i32, i32
  }
  func.func @transform_2(%arg0: i32) -> (i32, i32) {
    %c0_i32 = arith.constant 0 : i32
    %c0_i32_0 = arith.constant 0 : i32
    %c0_i32_1 = arith.constant 0 : i32
    return %c0_i32, %c0_i32_0 : i32, i32
  }
  func.func @transform_3(%arg0: i32) -> (i32, i32) {
    %c0_i32 = arith.constant 0 : i32
    %c0_i32_0 = arith.constant 0 : i32
    %c0_i32_1 = arith.constant 0 : i32
    return %c0_i32, %c0_i32_0 : i32, i32
  }
  func.func @transform_4(%arg0: i32) -> (i32, i32) {
    %c0_i32 = arith.constant 0 : i32
    %c0_i32_0 = arith.constant 0 : i32
    %c0_i32_1 = arith.constant 0 : i32
    return %c0_i32, %c0_i32_0 : i32, i32
  }
  func.func @transform_5(%arg0: i32) -> (i32, i32) {
    %c0_i32 = arith.constant 0 : i32
    %c0_i32_0 = arith.constant 0 : i32
    return %c0_i32, %arg0 : i32, i32
  }
}

</mosaic_0001>

<bundles_post_ra>
// kernel: tpu_custom_call.1
= control target key start
LH: loop header
LB: loop body
LE: loop exit
PB: predicated region body
PF: predicated region fallthrough
CT: control target
= control target key end

     0   :  { %10 = vsyncpa [#allocation3], 0  ;;  %s4895_s0 = inlined_call_operand.vmem [shape: f32[4,512], index: 0, kind: input, shape index: {}]   ;;  %s4896_s1 = inlined_call_operand.vmem [shape: bf16[37,8], index: 1, kind: input, shape index: {}]   ;;  %s4897_s2 = inlined_call_operand.vmem [shape: bf16[73,8], index: 2, kind: input, shape index: {}]   ;;  %s4898_s3 = inlined_call_operand.vmem [shape: bf16[73,8], index: 3, kind: input, shape index: {}]   ;;  %s4899_s4 = inlined_call_operand.vmem [shape: bf16[73,8], index: 4, kind: input, shape index: {}]   ;;  %s4900_s5 = inlined_call_operand.hbm [shape: f32[8,512], index: 5, kind: output, shape index: {}]  }
   0x1   :  { %12 = vsyncpa [#allocation3 + $0x1], 0  ;;  %s4178_s18 = smov 0   ;;  %s4180_s19 = smov 0  }
   0x2   :  { %s4182_s20 = smov 0   ;;  %s4184_s21 = smov 0  }
   0x3 LB: > { %s4199_s22 = sadd.s32 4294967295, %s4128_s21   ;;  %s3456_s23 = sadd.s32 4294967294, %s4128_s21   ;;  %s4128_s21 = sphi %s4184_s21, %s4923_s21   ;;  %s4124_s20 = sphi %s4182_s20, %s4922_s20   ;;  %s4120_s19 = sphi %s4180_s19, %s4921_s19   ;;  %s4116_s18 = sphi %s4178_s18, %s4920_s18  }
   0x4   : > { %s4203_s24 = sadd.s32 1, %s4128_s21   ;;  %s135_s25 = sadd.s32 1, %s4124_s20 }
   0x5   : > { %s132_s26 = ssub.s32 %s4128_s21, %s4203_s24  ;;  %p145_p0 = scmp.ne.s32.totalorder %s4124_s20, %s4120_s19 }
   0x6   : > { %p133_p1 = scmp.eq.s32.totalorder %s132_s26, 0  ;;  %p146_p2 = scmp.eq.s32.totalorder %s4199_s22, 1 }
   0x7   : > { %p151_p3 = scmp.ne.s32.totalorder %s4120_s19, %s4116_s18  ;;  %p152_p4 = scmp.eq.s32.totalorder %s3456_s23, 1 }
   0x8   : > { %s4214_s27 = scalar_select %p133_p1, %s4124_s20, %s135_s25  }
   0x9   : > { %p4216_p5 = por %p146_p2, %p145_p0  ;;  %p4220_p6 = por %p152_p4, %p151_p3 }
   0xa   : > { %p3459_p7 = scmp.ge.s32.totalorder %s4128_s21, 1  ;;  %p191_p8 = scmp.lt.s32.totalorder %s4128_s21, 3 }
   0xc   : > { %p192_p9 = pnand %p3459_p7, %p191_p8 }
   0xd   : > { %s3461_s30 = sshll.u32 (!%p192_p9), %s4199_s22, 1  ;;  %s4130_s10 = smov (!%p192_p9), 127   ;;  %v4138_v3 = vmov (!%p192_p9), 0   ;;  %v4048_v4 = vld [vmem:[%s4896_s1] sm:$0xff] (!%p192_p9)   ;;  %v4049_v5 = vld [vmem:[%s4896_s1 + $0x8] sm:$0xff] (!%p192_p9)   ;;  %v238_v7 = vlaneseq (!%p192_p9)  ;;  %vm332_vm5 = vcmask (!%p192_p9), 1041408  }
   0xe   : > { %195 = sbr.rel (%p192_p9) target bundleno = 2440 (0x988), region = 40  ;;  %p220_p10 = scmp.lt.s32.totalorder (!%p192_p9), %s3461_s30, 3  ;;  %452 = vmatprep.mubr.bf16.mxu0 (!%p192_p9), %v4138_v3  ;;  %680 = vmatprep.mubr.bf16.mxu1 (!%p192_p9), %v4138_v3  ;;  %v4050_v6 = vld [vmem:[%s4896_s1 + $0x10] ss:$0 sps:$4 sm:$0x77] (!%p192_p9)   ;;  %v4139_v17 = vmov (!%p192_p9), 65535  }
   0xf   : > { %s4131_s11 = smov (!%p192_p9), 112   ;;  %s4132_s12 = smov (!%p192_p9), 126   ;;  %v4258_v8 = vand.u32 (!%p192_p9), 127, %v238_v7  ;;  %v4272_v18 = vsel (!%p192_p9), %vm332_vm5, 4294967295, %v4139_v17  ;;  %vm339_vm7 = vcmask (!%p192_p9), 1043456   ;;  %vm344_vm9 = vcmask (!%p192_p9), 1045504  }
  0x10   : > { %s4133_s13 = smov (!%p192_p9), 110   ;;  %s4906_s14 = smov (!%p192_p9), 96   ;;  %vm413_vm11 = vcmask (!%p192_p9), 1042432   ;;  %vm409_vm12 = vcmask (!%p192_p9), 302080   ;;  %vm641_vm13 = vcmask (!%p192_p9), 1044480   ;;  %vm4905_vm14 = vcmask (!%p192_p9), 596992  }
  0x11   : > { %s4903_s15 = smov (!%p192_p9), 111   ;;  %s4907_s16 = smov (!%p192_p9), 95   ;;  %vm240_vm0 = vcmp.lt.s32.totalorder (!%p192_p9), %v4258_v8, 127  ;;  %vm249_vm1 = vcmp.lt.s32.totalorder (!%p192_p9), %v4258_v8, 126  ;;  %vm276_vm2 = vcmp.lt.s32.totalorder (!%p192_p9), %v4258_v8, 110  ;;  %vm285_vm3 = vcmp.lt.s32.totalorder (!%p192_p9), %v4258_v8, 96 }
  0x12   : > { %s4901_s17 = smov (!%p192_p9), 94   ;;  %vm258_vm4 = vcmp.lt.s32.totalorder (!%p192_p9), %v4258_v8, 112  ;;  %vm267_vm6 = vcmp.lt.s32.totalorder (!%p192_p9), %v4258_v8, 111  ;;  %vm294_vm8 = vcmp.lt.s32.totalorder (!%p192_p9), %v4258_v8, 95  ;;  %vm303_vm10 = vcmp.lt.s32.totalorder (!%p192_p9), %v4258_v8, 94  ;;  %s4142_s8 = smov (!%p192_p9), 80  }
  0x13   : > { %s4144_s23 = smov (!%p192_p9), 32   ;;  %vm1012_vm15 = vcmp.lt.s32.totalorder (!%p192_p9), %v4258_v8, 12  ;;  %s4914_s25 = smov (!%p192_p9), 111  }
  0x14   : > { %s4915_s26 = smov (!%p192_p9), 94   ;;  %s4147_s7 = smov (!%p192_p9), [#allocation2]  }
  0x15   : > { %s4925_s30 = smov (!%p220_p10, %s3461_s30), 3 }
  0x16   : > { %s3462_s6 = sshll.u32 %s4925_s30, 2 }
  0x17   : > { %s223_s9 = scalar_lea.vmem %s4895_s0, %s3462_s6 }
  0x18   : > { %v4230_v0 = vld [vmem:[%s223_s9] sm:$0xff]  ;;  %s4143_s9 = smov 64  }
  0x19   : > { %v4234_v1 = vcombine.high %v4230_v0, %v4230_v0  ;;  %v232_v16 = vpack.c.bf16 %v4230_v0, %v4230_v0 }
  0x1b   : > { %v3852_v2 = vpack.i.bf16 %v4234_v1, %v4230_v0  ;;  %v233_v15 = vpack.c.bf16 %v4234_v1, %v4234_v1 }
  0x1d   : > { %3853 = vrot.lane.b32.xlu0 %v3852_v2, %s4130_s10  ;;  %3863 = vrot.lane.b32.xlu1 %v3852_v2, %s4131_s11 }
  0x21   : > { %3858 = vrot.lane.b32.xlu0 %v3852_v2, %s4132_s12  ;;  %3868 = vrot.lane.b32.xlu1 %v3852_v2, %s4133_s13 }
  0x25   : > { %3873 = vrot.lane.b32.xlu0 %v3852_v2, %s4906_s14  ;;  %3878 = vrot.lane.b32.xlu1 %v3852_v2, %s4903_s15 }
  0x29   : > { %3883 = vrot.lane.b32.xlu0 %v3852_v2, %s4907_s16  ;;  %3888 = vrot.lane.b32.xlu1 %v3852_v2, %s4901_s17 }
  0x47   : > { %393 = vxpose.xlu0.c.b16.start [1/3] (short) (narrow) %v4048_v4, 16 }
  0x4b   : > { %394 = vxpose.xlu0.c.b16.cont [2/3] (short) (narrow) %v4049_v5, 16 }
  0x4f   : > { %395 = vxpose.xlu0.c.b16.end [3/3] (short) (narrow) %v4050_v6, 16 }
  0x8f   : > { %v3854_v9 = vpop.permute.xlu0 %3853  ;;  %v3864_v10 = vpop.permute.xlu1 %3863 }
  0x90   : > { %v3856_v11 = vunpack.i.h.bf16 %v3854_v9  ;;  %v3855_v12 = vunpack.i.l.bf16 %v3854_v9  ;;  %v3866_v13 = vunpack.i.h.bf16 %v3864_v10  ;;  %v3865_v14 = vunpack.i.l.bf16 %v3864_v10 }
  0x92   : > { %v241_v19 = vsel %vm240_vm0, %v3855_v12, %v3856_v11  ;;  %v242_v20 = vsel %vm240_vm0, %v3856_v11, %v3855_v12  ;;  %v260_v21 = vsel %vm258_vm4, %v3866_v13, %v3865_v14  ;;  %v259_v22 = vsel %vm258_vm4, %v3865_v14, %v3866_v13 }
  0x93   : > { %v243_v23 = vpack.c.bf16 %v241_v19, %v241_v19  ;;  %v244_v24 = vpack.c.bf16 %v242_v20, %v242_v20  ;;  %v3859_v25 = vpop.permute.xlu0 %3858  ;;  %v3869_v26 = vpop.permute.xlu1 %3868  ;;  %v262_v27 = vpack.c.bf16 %v260_v21, %v260_v21  ;;  %v261_v28 = vpack.c.bf16 %v259_v22, %v259_v22 }
  0x94   : > { %v3861_v29 = vunpack.i.h.bf16 %v3859_v25  ;;  %v3860_v30 = vunpack.i.l.bf16 %v3859_v25  ;;  %v3871_v31 = vunpack.i.h.bf16 %v3869_v26  ;;  %v3870_v32 = vunpack.i.l.bf16 %v3869_v26 }
  0x95   : > { %v310_v33 = vrot.slane %v243_v23, 6  ;;  %v311_v34 = vrot.slane %v244_v24, 6  ;;  %v319_v35 = vrot.slane %v262_v27, 2  ;;  %v318_v36 = vrot.slane %v261_v28, 2 }
  0x96   : > { %v250_v37 = vsel %vm249_vm1, %v3860_v30, %v3861_v29  ;;  %v251_v38 = vsel %vm249_vm1, %v3861_v29, %v3860_v30  ;;  %v277_v39 = vsel %vm276_vm2, %v3870_v32, %v3871_v31  ;;  %v278_v40 = vsel %vm276_vm2, %v3871_v31, %v3870_v32 }
  0x97   : > { %v252_v41 = vpack.c.bf16 %v250_v37, %v250_v37  ;;  %v253_v42 = vpack.c.bf16 %v251_v38, %v251_v38  ;;  %v279_v43 = vpack.c.bf16 %v277_v39, %v277_v39  ;;  %v280_v44 = vpack.c.bf16 %v278_v40, %v278_v40  ;;  %v3874_v45 = vpop.permute.xlu0 %3873  ;;  %v3879_v46 = vpop.permute.xlu1 %3878 }
  0x98   : > { %v3876_v47 = vunpack.i.h.bf16 %v3874_v45  ;;  %v3875_v48 = vunpack.i.l.bf16 %v3874_v45  ;;  %v3881_v49 = vunpack.i.h.bf16 %v3879_v46  ;;  %v3880_v50 = vunpack.i.l.bf16 %v3879_v46  ;;  %v4051_v46 = vld [vmem:[%s4897_s2] sm:$0xff]  }
  0x99   : > { %v314_v51 = vrot.slane %v252_v41, 4  ;;  %v322_v52 = vrot.slane %v279_v43, 6  ;;  %v323_v53 = vrot.slane %v280_v44, 6  ;;  %v315_v54 = vrot.slane %v253_v42, 4 }
  0x9a   : > { %v286_v55 = vsel %vm285_vm3, %v3875_v48, %v3876_v47  ;;  %v287_v56 = vsel %vm285_vm3, %v3876_v47, %v3875_v48  ;;  %v268_v57 = vsel %vm267_vm6, %v3880_v50, %v3881_v49  ;;  %v269_v58 = vsel %vm267_vm6, %v3881_v49, %v3880_v50  ;;  %v4052_v47 = vld [vmem:[%s4897_s2 + $0x8] sm:$0xff]   ;;  %v4053_v48 = vld [vmem:[%s4897_s2 + $0x10] sm:$0xff]   ;;  %v4054_v49 = vld [vmem:[%s4897_s2 + $0x18] sm:$0xff]  }
  0x9b   : > { %v288_v59 = vpack.c.bf16 %v286_v55, %v286_v55  ;;  %v289_v60 = vpack.c.bf16 %v287_v56, %v287_v56  ;;  %v270_v61 = vpack.c.bf16 %v268_v57, %v268_v57  ;;  %v271_v62 = vpack.c.bf16 %v269_v58, %v269_v58  ;;  %v3884_v63 = vpop.permute.xlu0 %3883  ;;  %v3889_v5 = vpop.permute.xlu1 %3888  ;;  %v4055_v50 = vld [vmem:[%s4897_s2 + $0x20] sm:$0x1f]  }
  0x9c   : > { %v3886_v0 = vunpack.i.h.bf16 %v3884_v63  ;;  %v3885_v1 = vunpack.i.l.bf16 %v3884_v63  ;;  %v338_v2 = vsel %vm332_vm5, %v233_v15, %v311_v34  ;;  %v335_v4 = vsel %vm332_vm5, %v232_v16, %v310_v33 }
  0x9d   : > { %v326_v6 = vrot.slane %v288_v59, 4  ;;  %v327_v9 = vrot.slane %v289_v60, 4  ;;  %v343_v10 = vsel %vm339_vm7, %v338_v2, %v315_v54  ;;  %v341_v11 = vsel %vm339_vm7, %v335_v4, %v314_v51 }
  0x9e   : > { %v295_v12 = vsel %vm294_vm8, %v3885_v1, %v3886_v0  ;;  %v296_v13 = vsel %vm294_vm8, %v3886_v0, %v3885_v1  ;;  %v349_v14 = vsel %vm344_vm9, %v343_v10, %v319_v35  ;;  %v346_v19 = vsel %vm344_vm9, %v341_v11, %v318_v36 }
  0x9f   : > { %v297_v15 = vpack.c.bf16 %v295_v12, %v295_v12  ;;  %v298_v20 = vpack.c.bf16 %v296_v13, %v296_v13  ;;  %420 = vmatprep.subr.bf16.mxu0 %v349_v14  ;;  %v3891_v16 = vunpack.i.h.bf16 %v3889_v5  ;;  %v3890_v21 = vunpack.i.l.bf16 %v3889_v5 }
  0xa0   : > { %421 = vmatpush1.bf16.msra.mxu0 %v346_v19  ;;  %v356_v22 = vsel %vm332_vm5, %v271_v62, %v323_v53  ;;  %v353_v23 = vsel %vm332_vm5, %v270_v61, %v322_v52  ;;  %v415_v27 = vsel %vm413_vm11, %v4272_v18, 0 }
  0xa1   : > { %v304_v24 = vsel %vm303_vm10, %v3890_v21, %v3891_v16  ;;  %v305_v25 = vsel %vm303_vm10, %v3891_v16, %v3890_v21  ;;  %v331_v26 = vrot.slane %v298_v20, 2  ;;  %v360_v30 = vsel %vm339_vm7, %v356_v22, %v327_v9 }
  0xa2   : > { %v306_v28 = vpack.c.bf16 %v304_v24, %v304_v24  ;;  %v307_v29 = vpack.c.bf16 %v305_v25, %v305_v25  ;;  %v330_v31 = vrot.slane %v297_v15, 2  ;;  %v358_v33 = vsel %vm339_vm7, %v353_v23, %v326_v6 }
  0xa3   : > { %v365_v32 = vsel %vm344_vm9, %v360_v30, %v331_v26 }
  0xa4   : > { %422 = vmatprep.subr.bf16.mxu0 %v365_v32  ;;  %v362_v34 = vsel %vm344_vm9, %v358_v33, %v330_v31  ;;  %v371_v35 = vsel %vm332_vm5, %v307_v29, 1065369472  ;;  %v369_v36 = vsel %vm332_vm5, %v306_v28, 1065369472 }
  0xa5   : > { %423 = vmatpush1.bf16.msra.mxu0 %v362_v34  ;;  %v418_v37 = vand.u32 %v415_v27, %v371_v35  ;;  %v416_v38 = vand.u32 %v415_v27, %v369_v36 }
  0xa7   : > { %424 = vmatprep.subr.bf16.mxu0 %v418_v37 }
  0xa9   : > { %425 = vmatpush1.bf16.msra.mxu0 %v416_v38 }
  0xad   : > { %v401_v18 = vpop.trf.xlu0 }
  0xae   : > { %3466 = vmatmul.mubr.msk.bf16.vlgmr.msra.gmra.mrb[0].mxu0 %vm409_vm12, %v401_v18  ;;  %vm1063_vm12 = vcmask 130048  }
 0x181   : > { %v454_v39 = vpop.f32.mrb[0].mxu0 }
 0x182   : > { %v461_v40 = vmax.f32 %v454_v39, 0.0  ;;  %v456_v41 = vpop.f32.mrb[1].mxu0 }
 0x183   : > { %v462_v42 = vmax.f32 %v456_v41, 0.0  ;;  %v458_v43 = vpop.f32.mrb[2].mxu0 }
 0x184   : > { %v459_v44 = vpop.f32.mrb[3].mxu0  ;;  %v463_v63 = vpack.c.bf16 %v461_v40, %v461_v40 }
 0x185   : > { %v3892_v45 = vpack.i.bf16 %v462_v42, %v461_v40  ;;  %v464_v61 = vpack.c.bf16 %v462_v42, %v462_v42 }
 0x187   : > { %3893 = vrot.lane.b32.xlu1 %v3892_v45, %s4130_s10 }
 0x18b   : > { %3898 = vrot.lane.b32.xlu1 %v3892_v45, %s4131_s11 }
 0x18f   : > { %3903 = vrot.lane.b32.xlu1 %v3892_v45, %s4132_s12 }
 0x193   : > { %3908 = vrot.lane.b32.xlu1 %v3892_v45, %s4133_s13 }
 0x197   : > { %3913 = vrot.lane.b32.xlu1 %v3892_v45, %s4903_s15  ;;  %s4140_s15 = smov 48  }
 0x19b   : > { %3918 = vrot.lane.b32.xlu1 %v3892_v45, %s4907_s16 }
 0x19f   : > { %3923 = vrot.lane.b32.xlu1 %v3892_v45, %s4906_s14 }
 0x1a3   : > { %3928 = vrot.lane.b32.xlu1 %v3892_v45, %s4901_s17  ;;  %s4141_s17 = smov 16  }
 0x1c6   : > { %621 = vxpose.xlu1.c.b16.start [1/5] (short) (narrow) %v4051_v46, 16 }
 0x1ca   : > { %622 = vxpose.xlu1.c.b16.cont [2/5] (short) (narrow) %v4052_v47, 16 }
 0x1ce   : > { %623 = vxpose.xlu1.c.b16.cont [3/5] (short) (narrow) %v4053_v48, 16 }
 0x1d2   : > { %624 = vxpose.xlu1.c.b16.cont [4/5] (short) (narrow) %v4054_v49, 16 }
 0x1d6   : > { %625 = vxpose.xlu1.c.b16.end [5/5] (short) (narrow) %v4055_v50, 16 }
 0x1f9   : > { %v3894_v51 = vpop.permute.xlu1 %3893 }
 0x1fa   : > { %v3896_v52 = vunpack.i.h.bf16 %v3894_v51  ;;  %v3895_v53 = vunpack.i.l.bf16 %v3894_v51 }
 0x1fc   : > { %v470_v54 = vsel %vm240_vm0, %v3896_v52, %v3895_v53  ;;  %v469_v55 = vsel %vm240_vm0, %v3895_v53, %v3896_v52 }
 0x1fd   : > { %v3899_v56 = vpop.permute.xlu1 %3898  ;;  %v472_v57 = vpack.c.bf16 %v470_v54, %v470_v54  ;;  %v471_v58 = vpack.c.bf16 %v469_v55, %v469_v55 }
 0x1fe   : > { %v3901_v59 = vunpack.i.h.bf16 %v3899_v56  ;;  %v3900_v60 = vunpack.i.l.bf16 %v3899_v56 }
 0x1ff   : > { %v532_v62 = vrot.slane %v472_v57, 4  ;;  %v531_v0 = vrot.slane %v471_v58, 4  ;;  %v642_v57 = vsel %vm339_vm7, 4294967295, %v4139_v17 }
 0x200   : > { %v485_v1 = vsel %vm258_vm4, %v3900_v60, %v3901_v59  ;;  %v486_v2 = vsel %vm258_vm4, %v3901_v59, %v3900_v60 }
 0x201   : > { %v487_v4 = vpack.c.bf16 %v485_v1, %v485_v1  ;;  %v488_v5 = vpack.c.bf16 %v486_v2, %v486_v2  ;;  %v3904_v6 = vpop.permute.xlu1 %3903  ;;  %v551_v9 = vsel %vm339_vm7, %v464_v61, %v532_v62  ;;  %v547_v10 = vsel %vm339_vm7, %v463_v63, %v531_v0 }
 0x202   : > { %v3906_v11 = vunpack.i.h.bf16 %v3904_v6  ;;  %v3905_v12 = vunpack.i.l.bf16 %v3904_v6  ;;  %648 = vmatprep.subr.bf16.mxu1 %v551_v9  ;;  %v4389_v0 = vsel %vm641_vm13, %v642_v57, 0  ;;  %vm2913_vm13 = vcmask 261120  }
 0x203   : > { %649 = vmatpush1.bf16.msra.mxu1 %v547_v10  ;;  %v536_v20 = vrot.slane %v488_v5, 4  ;;  %v535_v21 = vrot.slane %v487_v4, 4 }
 0x204   : > { %v477_v13 = vsel %vm249_vm1, %v3905_v12, %v3906_v11  ;;  %v478_v14 = vsel %vm249_vm1, %v3906_v11, %v3905_v12 }
 0x205   : > { %v3909_v19 = vpop.permute.xlu1 %3908  ;;  %v480_v15 = vpack.c.bf16 %v478_v14, %v478_v14  ;;  %v479_v16 = vpack.c.bf16 %v477_v13, %v477_v13 }
 0x206   : > { %v3911_v22 = vunpack.i.h.bf16 %v3909_v19  ;;  %v3910_v23 = vunpack.i.l.bf16 %v3909_v19 }
 0x207   : > { %v559_v24 = vsel %vm339_vm7, %v480_v15, %v536_v20  ;;  %v555_v25 = vsel %vm339_vm7, %v479_v16, %v535_v21 }
 0x208   : > { %v501_v26 = vsel %vm276_vm2, %v3910_v23, %v3911_v22  ;;  %v502_v27 = vsel %vm276_vm2, %v3911_v22, %v3910_v23  ;;  %650 = vmatprep.subr.bf16.mxu1 %v559_v24  ;;  %v4145_v22 = vmov 1983009808  }
 0x209   : > { %v503_v28 = vpack.c.bf16 %v501_v26, %v501_v26  ;;  %v504_v29 = vpack.c.bf16 %v502_v27, %v502_v27  ;;  %v3914_v30 = vpop.permute.xlu1 %3913  ;;  %651 = vmatpush1.bf16.msra.mxu1 %v555_v25  ;;  %v738_v23 = vunpack.c.l.s4 %v4145_v22  ;;  %v741_v26 = vshrl.u32 %v238_v7, 7 }
 0x20a   : > { %v3916_v31 = vunpack.i.h.bf16 %v3914_v30  ;;  %v3915_v32 = vunpack.i.l.bf16 %v3914_v30  ;;  %v4146_v27 = vmov 1934713408  }
 0x20b   : > { %v540_v37 = vrot.slane %v504_v29, 4  ;;  %v539_v18 = vrot.slane %v503_v28, 4  ;;  %v739_v25 = vunpack.c.0.s8 %v738_v23  ;;  %v802_v28 = vunpack.c.l.s4 %v4146_v27 }
 0x20c   : > { %v493_v33 = vsel %vm267_vm6, %v3915_v32, %v3916_v31  ;;  %v494_v34 = vsel %vm267_vm6, %v3916_v31, %v3915_v32 }
 0x20d   : > { %v3919_v35 = vpop.permute.xlu1 %3918  ;;  %v496_v36 = vpack.c.bf16 %v494_v34, %v494_v34  ;;  %v495_v38 = vpack.c.bf16 %v493_v33, %v493_v33  ;;  %v4429_v31 = vsub.s32 %v739_v25, %v741_v26  ;;  %v803_v33 = vunpack.c.0.s8 %v802_v28 }
 0x20e   : > { %v3921_v39 = vunpack.i.h.bf16 %v3919_v35  ;;  %v3920_v40 = vunpack.i.l.bf16 %v3919_v35 }
 0x20f   : > { %v567_v41 = vsel %vm339_vm7, %v496_v36, %v540_v37  ;;  %v563_v42 = vsel %vm339_vm7, %v495_v38, %v539_v18  ;;  %v4434_v18 = vsub.s32 %v803_v33, %v741_v26 }
 0x210   : > { %v517_v43 = vsel %vm294_vm8, %v3920_v40, %v3921_v39  ;;  %v518_v44 = vsel %vm294_vm8, %v3921_v39, %v3920_v40  ;;  %652 = vmatprep.subr.bf16.mxu1 %v567_v41 }
 0x211   : > { %v519_v45 = vpack.c.bf16 %v517_v43, %v517_v43  ;;  %v520_v46 = vpack.c.bf16 %v518_v44, %v518_v44  ;;  %v3924_v47 = vpop.permute.xlu1 %3923  ;;  %653 = vmatpush1.bf16.msra.mxu1 %v563_v42 }
 0x212   : > { %v3926_v48 = vunpack.i.h.bf16 %v3924_v47  ;;  %v3925_v49 = vunpack.i.l.bf16 %v3924_v47 }
 0x213   : > { %v544_v54 = vrot.slane %v520_v46, 4  ;;  %v543_v56 = vrot.slane %v519_v45, 4 }
 0x214   : > { %v509_v50 = vsel %vm285_vm3, %v3925_v49, %v3926_v48  ;;  %v510_v51 = vsel %vm285_vm3, %v3926_v48, %v3925_v49 }
 0x215   : > { %v3929_v52 = vpop.permute.xlu1 %3928  ;;  %v512_v53 = vpack.c.bf16 %v510_v51, %v510_v51  ;;  %v511_v55 = vpack.c.bf16 %v509_v50, %v509_v50 }
 0x216   : > { %v3931_v58 = vunpack.i.h.bf16 %v3929_v52  ;;  %v3930_v59 = vunpack.i.l.bf16 %v3929_v52 }
 0x217   : > { %v575_v60 = vsel %vm339_vm7, %v512_v53, %v544_v54  ;;  %v571_v61 = vsel %vm339_vm7, %v511_v55, %v543_v56 }
 0x218   : > { %v525_v62 = vsel %vm303_vm10, %v3930_v59, %v3931_v58  ;;  %v526_v63 = vsel %vm303_vm10, %v3931_v58, %v3930_v59  ;;  %654 = vmatprep.subr.bf16.mxu1 %v575_v60 }
 0x219   : > { %v527_v1 = vpack.c.bf16 %v525_v62, %v525_v62  ;;  %v528_v2 = vpack.c.bf16 %v526_v63, %v526_v63  ;;  %655 = vmatpush1.bf16.msra.mxu1 %v571_v61  ;;  %v1009_v61 = vadd.s32 8, %v741_v26 }
 0x21b   : > { %v580_v17 = vsel %vm339_vm7, %v528_v2, 1065369472  ;;  %v578_v4 = vsel %vm339_vm7, %v527_v1, 1065369472  ;;  %vm1011_vm5 = vcmp.lt.s32.totalorder %v1009_v61, 12 }
 0x21c   : > { %v646_v5 = vand.u32 %v4389_v0, %v580_v17  ;;  %v644_v6 = vand.u32 %v4389_v0, %v578_v4  ;;  %vm4487_vm9 = vmand %vm1011_vm5, %vm1012_vm15  ;;  %vm2917_vm5 = vcmask 523264  }
 0x21d   : > { %vm4497_vm11 = vmpackc.low %vm4487_vm9, %vm1012_vm15 }
 0x21e   : > { %656 = vmatprep.subr.bf16.mxu1 %v646_v5 }
 0x21f   : > { %657 = vmatpush1.bf16.msra.mxu1 %v644_v6 }
 0x22c   : > { %v629_v9 = vpop.trf.xlu1 }
 0x22d   : > { %3472 = vmatmul.mubr.msk.bf16.vlgmr.msra.gmra.mrb[0].mxu1 %vm4905_vm14, %v629_v9  ;;  %vm2923_vm14 = vcmask 916480  }
 0x300   : > { %v682_v10 = vpop.f32.mrb[0].mxu1 }
 0x301   : > { %v4396_v11 = vmax.f32 %v682_v10, 0.0  ;;  %v684_v12 = vpop.f32.mrb[1].mxu1 }
 0x302   : > { %v4398_v13 = vmax.f32 %v684_v12, 0.0  ;;  %v686_v14 = vpop.f32.mrb[2].mxu1 }
 0x303   : > { %692 = vrot.lane.b32.xlu0 %v4396_v11, %s4131_s11  ;;  %v687_v19 = vpop.f32.mrb[3].mxu1 }
 0x304   : > { %726 = vrot.lane.b32.xlu1 %v4398_v13, %s4140_s15 }
 0x307   : > { %695 = vrot.lane.b32.xlu0 %v4396_v11, %s4906_s14 }
 0x308   : > { %732 = vrot.lane.b32.xlu1 %v4398_v13, %s4141_s17 }
 0x30b   : > { %698 = vrot.lane.b32.xlu0 %v4396_v11, %s4142_s8 }
 0x30f   : > { %701 = vrot.lane.b32.xlu0 %v4396_v11, %s4143_s9 }
 0x313   : > { %704 = vrot.lane.b32.xlu0 %v4396_v11, %s4140_s15 }
 0x317   : > { %707 = vrot.lane.b32.xlu0 %v4396_v11, %s4144_s23 }
 0x31b   : > { %710 = vrot.lane.b32.xlu0 %v4396_v11, %s4141_s17 }
 0x31f   : > { %714 = vrot.lane.b32.xlu0 %v4398_v13, %s4131_s11 }
 0x323   : > { %717 = vrot.lane.b32.xlu0 %v4398_v13, %s4906_s14 }
 0x327   : > { %720 = vrot.lane.b32.xlu0 %v4398_v13, %s4142_s8 }
 0x32b   : > { %723 = vrot.lane.b32.xlu0 %v4398_v13, %s4143_s9 }
 0x32f   : > { %729 = vrot.lane.b32.xlu0 %v4398_v13, %s4144_s23 }
 0x375   : > { %v693_v15 = vpop.permute.xlu0 %692 }
 0x376   : > { %v727_v45 = vpop.permute.xlu1 %726 }
 0x379   : > { %v696_v20 = vpop.permute.xlu0 %695 }
 0x37a   : > { %v735_v32 = vcombine.low %v4396_v11, %v696_v20  ;;  %v736_v55 = vcombine.high %v4396_v11, %v696_v20  ;;  %v733_v56 = vpop.permute.xlu1 %732 }
 0x37b   : > { %v919_v5 = vcombine.low %v727_v45, %v733_v56  ;;  %v920_v12 = vcombine.high %v727_v45, %v733_v56 }
 0x37c   : > { %v743_v37 = vrot.slane %v735_v32, %v4429_v31  ;;  %v750_v4 = vrot.slane %v736_v55, %v4429_v31 }
 0x37d   : > { %v699_v16 = vpop.permute.xlu0 %698  ;;  %v927_v22 = vrot.slane %v919_v5, %v4429_v31 }
 0x37e   : > { %v751_v29 = vcombine.low %v693_v15, %v699_v16  ;;  %v752_v50 = vcombine.high %v693_v15, %v699_v16 }
 0x380   : > { %v759_v34 = vrot.slane %v751_v29, %v4429_v31  ;;  %v766_v60 = vrot.slane %v752_v50, %v4429_v31 }
 0x381   : > { %v702_v21 = vpop.permute.xlu0 %701 }
 0x382   : > { %v799_v39 = vcombine.low %v743_v37, %v759_v34  ;;  %v800_v6 = vcombine.high %v743_v37, %v759_v34  ;;  %v815_v14 = vcombine.low %v750_v4, %v766_v60  ;;  %v816_v19 = vcombine.high %v750_v4, %v766_v60 }
 0x384   : > { %v807_v43 = vrot.slane %v799_v39, %v4434_v18  ;;  %v814_v23 = vrot.slane %v800_v6, %v4434_v18  ;;  %v823_v32 = vrot.slane %v815_v14, %v4434_v18  ;;  %v830_v37 = vrot.slane %v816_v19, %v4434_v18 }
 0x385   : > { %v705_v24 = vpop.permute.xlu0 %704 }
 0x389   : > { %v708_v30 = vpop.permute.xlu0 %707 }
 0x38a   : > { %v767_v35 = vcombine.low %v702_v21, %v708_v30  ;;  %v768_v53 = vcombine.high %v702_v21, %v708_v30  ;;  %v934_v30 = vrot.slane %v920_v12, %v4429_v31 }
 0x38c   : > { %v775_v7 = vrot.slane %v767_v35, %v4429_v31  ;;  %v782_v62 = vrot.slane %v768_v53, %v4429_v31 }
 0x38d   : > { %v711_v36 = vpop.permute.xlu0 %710 }
 0x38e   : > { %v783_v38 = vcombine.low %v705_v24, %v711_v36  ;;  %v784_v49 = vcombine.high %v705_v24, %v711_v36 }
 0x390   : > { %v791_v40 = vrot.slane %v783_v38, %v4429_v31  ;;  %v798_v57 = vrot.slane %v784_v49, %v4429_v31 }
 0x391   : > { %v715_v41 = vpop.permute.xlu0 %714 }
 0x392   : > { %v831_v42 = vcombine.low %v775_v7, %v791_v40  ;;  %v832_v63 = vcombine.high %v775_v7, %v791_v40  ;;  %v847_v9 = vcombine.low %v782_v62, %v798_v57  ;;  %v848_v20 = vcombine.high %v782_v62, %v798_v57 }
 0x394   : > { %v839_v44 = vrot.slane %v831_v42, %v4434_v18  ;;  %v846_v15 = vrot.slane %v832_v63, %v4434_v18  ;;  %v855_v26 = vrot.slane %v847_v9, %v4434_v18  ;;  %v862_v38 = vrot.slane %v848_v20, %v4434_v18 }
 0x395   : > { %v718_v46 = vpop.permute.xlu0 %717 }
 0x396   : > { %v4441_v47 = vcombine.high %v807_v43, %v839_v44  ;;  %v4443_v48 = vcombine.low %v807_v43, %v839_v44  ;;  %v871_v1 = vcombine.low %v4398_v13, %v718_v46  ;;  %v872_v2 = vcombine.high %v4398_v13, %v718_v46 }
 0x397   : > { %v866_v36 = vcombine.high %v814_v23, %v846_v15  ;;  %v868_v45 = vcombine.high %v823_v32, %v855_v26  ;;  %v867_v55 = vcombine.low %v823_v32, %v855_v26  ;;  %v865_v56 = vcombine.low %v814_v23, %v846_v15 }
 0x398   : > { %v4448_v51 = vsel %vm1012_vm15, %v4441_v47, 0.0  ;;  %v4453_v52 = vsel %vm1012_vm15, %v4443_v48, 0.0  ;;  %v879_v16 = vrot.slane %v871_v1, %v4429_v31  ;;  %v886_v13 = vrot.slane %v872_v2, %v4429_v31 }
 0x399   : > { %1145 = vxpose.xlu1.b32.start [1/2] (short) (narrow) %v4448_v51, 16  ;;  %1031 = vxpose.xlu0.b32.start [1/2] (short) (narrow) %v4453_v52, 16  ;;  %v721_v54 = vpop.permute.xlu0 %720  ;;  %v869_v57 = vcombine.low %v830_v37, %v862_v38  ;;  %v870_v14 = vcombine.high %v830_v37, %v862_v38  ;;  %v4556_v23 = vsel %vm1012_vm15, %v866_v36, 0.0  ;;  %v4572_v26 = vsel %vm1012_vm15, %v868_v45, 0.0 }
 0x39a   : > { %v887_v58 = vcombine.low %v715_v41, %v721_v54  ;;  %v888_v59 = vcombine.high %v715_v41, %v721_v54 }
 0x39c   : > { %v895_v10 = vrot.slane %v887_v58, %v4429_v31  ;;  %v902_v11 = vrot.slane %v888_v59, %v4429_v31 }
 0x39d   : > { %v724_v17 = vpop.permute.xlu0 %723 }
 0x39e   : > { %v935_v27 = vcombine.low %v879_v16, %v895_v10  ;;  %v936_v28 = vcombine.high %v879_v16, %v895_v10  ;;  %v951_v29 = vcombine.low %v886_v13, %v902_v11  ;;  %v952_v35 = vcombine.high %v886_v13, %v902_v11 }
 0x39f   : > { %v4536_v16 = vsel %vm1012_vm15, %v865_v56, 0.0 }
 0x3a0   : > { %v950_v42 = vrot.slane %v936_v28, %v4434_v18  ;;  %v959_v43 = vrot.slane %v951_v29, %v4434_v18  ;;  %v943_v44 = vrot.slane %v935_v27, %v4434_v18  ;;  %v966_v58 = vrot.slane %v952_v35, %v4434_v18 }
 0x3a1   : > { %v730_v21 = vpop.permute.xlu0 %729  ;;  %v4582_v28 = vsel %vm1012_vm15, %v870_v14, 0.0 }
 0x3a2   : > { %v903_v24 = vcombine.low %v724_v17, %v730_v21  ;;  %v904_v25 = vcombine.high %v724_v17, %v730_v21 }
 0x3a4   : > { %v911_v33 = vrot.slane %v903_v24, %v4429_v31  ;;  %v918_v34 = vrot.slane %v904_v25, %v4429_v31 }
 0x3a6   : > { %v967_v39 = vcombine.low %v911_v33, %v927_v22  ;;  %v968_v7 = vcombine.high %v911_v33, %v927_v22  ;;  %v983_v40 = vcombine.low %v918_v34, %v934_v30  ;;  %v984_v41 = vcombine.high %v918_v34, %v934_v30 }
 0x3a7   : > { %v4552_v22 = vsel %vm1012_vm15, %v869_v57, 0.0 }
 0x3a8   : > { %v982_v46 = vrot.slane %v968_v7, %v4434_v18  ;;  %v991_v49 = vrot.slane %v983_v40, %v4434_v18  ;;  %v975_v50 = vrot.slane %v967_v39, %v4434_v18  ;;  %v998_v54 = vrot.slane %v984_v41, %v4434_v18 }
 0x3aa   : > { %v1000_v59 = vcombine.high %v943_v44, %v975_v50  ;;  %v999_v60 = vcombine.low %v943_v44, %v975_v50  ;;  %v1002_v62 = vcombine.high %v950_v42, %v982_v46  ;;  %v1004_v63 = vcombine.high %v959_v43, %v991_v49 }
 0x3ab   : > { %v1003_v1 = vcombine.low %v959_v43, %v991_v49  ;;  %v1001_v2 = vcombine.low %v950_v42, %v982_v46  ;;  %v1005_v17 = vcombine.low %v966_v58, %v998_v54  ;;  %v1006_v4 = vcombine.high %v966_v58, %v998_v54 }
 0x3ac   : > { %v4503_v5 = vsel %vm4487_vm9, %v1000_v59, 0.0  ;;  %v4507_v6 = vsel %vm4487_vm9, %v999_v60, 0.0  ;;  %v3715_v9 = vpack.c.bf16 %v999_v60, %v4443_v48  ;;  %v3733_v10 = vpack.c.bf16 %v1002_v62, %v866_v36 }
 0x3ad   : > { %1146 = vxpose.xlu1.b32.end [2/2] (short) (narrow) %v4503_v5, 16  ;;  %1032 = vxpose.xlu0.b32.end [2/2] (short) (narrow) %v4507_v6, 16  ;;  %v3721_v11 = vpack.c.bf16 %v1000_v59, %v4441_v47  ;;  %v3739_v12 = vpack.c.bf16 %v1003_v1, %v867_v55  ;;  %v4517_v19 = vpack.c.bf16 %v1004_v63, %v868_v45  ;;  %v4532_v47 = vsel %vm1012_vm15, %v867_v55, 0.0 }
 0x3ae   : > { %3717 = vmatprep.subr.msk.bf16.mxu0 %vm4497_vm11, %v3715_v9  ;;  %3735 = vmatprep.subr.msk.bf16.mxu1 %vm4497_vm11, %v3733_v10  ;;  %v3727_v15 = vpack.c.bf16 %v1001_v2, %v865_v56  ;;  %v3751_v20 = vpack.c.bf16 %v1005_v17, %v869_v57  ;;  %v4523_v48 = vpack.c.bf16 %v1006_v4, %v870_v14  ;;  %v4542_v13 = vsel %vm4487_vm9, %v1003_v1, 0.0 }
 0x3af   : > { %3720 = vmatpush3.bf16.msk.msra.mxu0 %vm4497_vm11, %v3715_v9  ;;  %3738 = vmatpush3.bf16.msk.msra.mxu1 %vm4497_vm11, %v3733_v10  ;;  %v4546_v21 = vsel %vm4487_vm9, %v1001_v2, 0.0  ;;  %v4562_v24 = vsel %vm4487_vm9, %v1005_v17, 0.0  ;;  %v4566_v25 = vsel %vm4487_vm9, %v1002_v62, 0.0  ;;  %v4577_v27 = vsel %vm4487_vm9, %v1004_v63, 0.0 }
 0x3b0   : > { %3723 = vmatprep.subr.msk.bf16.mxu0 %vm4497_vm11, %v3721_v11  ;;  %3747 = vmatprep.subr.msk.bf16.mxu1 %vm4497_vm11, %v4517_v19  ;;  %v4587_v29 = vsel %vm4487_vm9, %v1006_v4, 0.0  ;;  %vm2915_vm15 = vcmask 392192   ;;  %vm2919_vm9 = vcmask 654336  }
 0x3b1   : > { %1484 = vxpose.xlu1.b32.start [1/2] (short) (narrow) %v4532_v47, 16  ;;  %1258 = vxpose.xlu0.b32.start [1/2] (short) (narrow) %v4536_v16, 16 }
 0x3b5   : > { %1485 = vxpose.xlu1.b32.end [2/2] (short) (narrow) %v4542_v13, 16  ;;  %1259 = vxpose.xlu0.b32.end [2/2] (short) (narrow) %v4546_v21, 16 }
 0x3b9   : > { %1710 = vxpose.xlu1.b32.start [1/2] (short) (narrow) %v4552_v22, 16  ;;  %1371 = vxpose.xlu0.b32.start [1/2] (short) (narrow) %v4556_v23, 16 }
 0x3bd   : > { %1711 = vxpose.xlu1.b32.end [2/2] (short) (narrow) %v4562_v24, 16  ;;  %1372 = vxpose.xlu0.b32.end [2/2] (short) (narrow) %v4566_v25, 16 }
 0x3c1   : > { %1597 = vxpose.xlu0.b32.start [1/2] (short) (narrow) %v4572_v26, 16 }
 0x3c5   : > { %1598 = vxpose.xlu0.b32.end [2/2] (short) (narrow) %v4577_v27, 16 }
 0x3c9   : > { %1823 = vxpose.xlu0.b32.start [1/2] (short) (narrow) %v4582_v28, 16 }
 0x3cd   : > { %1824 = vxpose.xlu0.b32.end [2/2] (short) (narrow) %v4587_v29, 16 }
 0x429   : > { %v1161_v30 = vpop.trf.xlu1  ;;  %v1047_v32 = vpop.trf.xlu0 }
 0x42a   : > { %3607 = vmatprep.mubr.msk.f32.mxu0 %vm1063_vm12, %v1047_v32 }
 0x42d   : > { %v1162_v33 = vpop.trf.xlu1  ;;  %v1048_v34 = vpop.trf.xlu0 }
 0x42e   : > { %3608 = vmatmul.mubr.msk.f32.vlgmr.msra.gmra.mrb[4].mxu0 %vm1063_vm12, %v1048_v34 }
 0x42f   : > { %3726 = vmatpush3.bf16.msk.msra.mxu0 %vm4497_vm11, %v3721_v11  ;;  %3614 = vmatprep.mubr.msk.f32.mxu0 %vm1063_vm12, %v1161_v30 }
 0x430   : > { %3729 = vmatprep.subr.msk.bf16.mxu0 %vm4497_vm11, %v3727_v15 }
 0x431   : > { %v1500_v35 = vpop.trf.xlu1  ;;  %v1274_v36 = vpop.trf.xlu0 }
 0x432   : > { %3615 = vmatmul.mubr.msk.f32.vlgmr.msra.gmra.mrb[6].mxu0 %vm1063_vm12, %v1162_v33 }
 0x433   : > { %3732 = vmatpush3.bf16.msk.msra.mxu0 %vm4497_vm11, %v3727_v15  ;;  %3621 = vmatprep.mubr.msk.f32.mxu0 %vm1063_vm12, %v1274_v36 }
 0x434   : > { %3741 = vmatprep.subr.msk.bf16.mxu0 %vm4497_vm11, %v3739_v12 }
 0x435   : > { %v1501_v37 = vpop.trf.xlu1  ;;  %v1275_v38 = vpop.trf.xlu0 }
 0x436   : > { %3622 = vmatmul.mubr.msk.f32.vlgmr.msra.gmra.mrb[8].mxu0 %vm1063_vm12, %v1275_v38 }
 0x437   : > { %3744 = vmatpush3.bf16.msk.msra.mxu0 %vm4497_vm11, %v3739_v12  ;;  %3635 = vmatprep.mubr.msk.f32.mxu0 %vm1063_vm12, %v1500_v35 }
 0x438   : > { %3753 = vmatprep.subr.msk.bf16.mxu0 %vm4497_vm11, %v3751_v20 }
 0x439   : > { %v1726_v39 = vpop.trf.xlu1  ;;  %v1387_v7 = vpop.trf.xlu0 }
 0x43a   : > { %3628 = vmatprep.mubr.msk.f32.mxu1 %vm1063_vm12, %v1387_v7  ;;  %3636 = vmatmul.mubr.msk.f32.vlgmr.msra.gmra.mrb[10].mxu0 %vm1063_vm12, %v1501_v37 }
 0x43b   : > { %3756 = vmatpush3.bf16.msk.msra.mxu0 %vm4497_vm11, %v3751_v20  ;;  %3649 = vmatprep.mubr.msk.f32.mxu0 %vm1063_vm12, %v1726_v39 }
 0x43d   : > { %v1727_v40 = vpop.trf.xlu1  ;;  %v1388_v41 = vpop.trf.xlu0 }
 0x43e   : > { %3629 = vmatmul.mubr.msk.f32.vlgmr.msra.gmra.mrb[4].mxu1 %vm1063_vm12, %v1388_v41  ;;  %3650 = vmatmul.mubr.msk.f32.vlgmr.msra.gmra.mrb[12].mxu0 %vm1063_vm12, %v1727_v40 }
 0x43f   : > { %3750 = vmatpush3.bf16.msk.msra.mxu1 %vm4497_vm11, %v4517_v19  ;;  %3663 = vmatprep.mubr.msk.f32.mxu0 %vm1063_vm12, %v4453_v52 }
 0x440   : > { %3759 = vmatprep.subr.msk.bf16.mxu1 %vm4497_vm11, %v4523_v48 }
 0x441   : > { %v1613_v42 = vpop.trf.xlu0 }
 0x442   : > { %3642 = vmatprep.mubr.msk.f32.mxu1 %vm1063_vm12, %v1613_v42 }
 0x445   : > { %v1614_v43 = vpop.trf.xlu0 }
 0x446   : > { %3643 = vmatmul.mubr.msk.f32.vlgmr.msra.gmra.mrb[6].mxu1 %vm1063_vm12, %v1614_v43 }
 0x447   : > { %3762 = vmatpush3.bf16.msk.msra.mxu1 %vm4497_vm11, %v4523_v48  ;;  %vm2921_vm11 = vcmask 785408  }
 0x449   : > { %v1839_v44 = vpop.trf.xlu0 }
 0x44a   : > { %3656 = vmatprep.mubr.msk.f32.mxu1 %vm1063_vm12, %v1839_v44 }
 0x44d   : > { %v1840_v45 = vpop.trf.xlu0 }
 0x44e   : > { %3657 = vmatmul.mubr.msk.f32.vlgmr.msra.gmra.mrb[8].mxu1 %vm1063_vm12, %v1840_v45 }
 0x44f   : > { %3670 = vmatprep.mubr.msk.f32.mxu1 %vm1063_vm12, %v4448_v51 }
 0x501   : > { %v3609_v52 = vpop.f32.mrb[4].mxu0 }
 0x502   : > { %v1136_v46 = vpop.f32.mrb[5].mxu0 }
 0x503   : > { %v3763_v49 = vpack.c.bf16 %v3609_v52, %v1136_v46 }
 0x505   : > { %v3616_v50 = vpop.f32.mrb[6].mxu0  ;;  %3764 = vmatprep.subr.bf16.mxu0 %v3763_v49 }
 0x506   : > { %v1249_v53 = vpop.f32.mrb[7].mxu0  ;;  %3766 = vmatpush3.bf16.msra.mxu0 %v3763_v49 }
 0x507   : > { %v3767_v54 = vpack.c.bf16 %v3616_v50, %v1249_v53 }
 0x509   : > { %v3623_v55 = vpop.f32.mrb[8].mxu0  ;;  %3664 = vmatmul.mubr.msk.f32.vlgmr.msra.gmra.mrb[14].mxu0 %vm1063_vm12, %v4507_v6  ;;  %3768 = vmatprep.subr.bf16.mxu1 %v3767_v54 }
 0x50a   : > { %v1362_v56 = vpop.f32.mrb[9].mxu0  ;;  %3770 = vmatpush3.bf16.msra.mxu1 %v3767_v54  ;;  %3677 = vmatprep.mubr.msk.f32.mxu0 %vm1063_vm12, %v4536_v16 }
 0x50b   : > { %v3771_v57 = vpack.c.bf16 %v3623_v55, %v1362_v56 }
 0x50d   : > { %v3637_v51 = vpop.f32.mrb[10].mxu0  ;;  %3671 = vmatmul.mubr.msk.f32.vlgmr.msra.gmra.mrb[10].mxu1 %vm1063_vm12, %v4503_v5  ;;  %3772 = vmatprep.subr.bf16.mxu0 %v3771_v57 }
 0x50e   : > { %v1588_v58 = vpop.f32.mrb[11].mxu0  ;;  %3774 = vmatpush3.bf16.msra.mxu0 %v3771_v57  ;;  %3684 = vmatprep.mubr.msk.f32.mxu1 %vm1063_vm12, %v4556_v23 }
 0x50f   : > { %v3779_v59 = vpack.c.bf16 %v3637_v51, %v1588_v58 }
 0x511   : > { %v3630_v60 = vpop.f32.mrb[4].mxu1  ;;  %v3651_v62 = vpop.f32.mrb[12].mxu0  ;;  %3678 = vmatmul.mubr.msk.f32.vlgmr.msra.gmra.mrb[16].mxu0 %vm1063_vm12, %v4546_v21  ;;  %3780 = vmatprep.subr.bf16.mxu0 %v3779_v59 }
 0x512   : > { %v1475_v63 = vpop.f32.mrb[5].mxu1  ;;  %v1814_v61 = vpop.f32.mrb[13].mxu0  ;;  %3782 = vmatpush3.bf16.msra.mxu0 %v3779_v59  ;;  %3691 = vmatprep.mubr.msk.f32.mxu0 %vm1063_vm12, %v4532_v47 }
 0x513   : > { %v3775_v1 = vpack.c.bf16 %v3630_v60, %v1475_v63  ;;  %v3787_v2 = vpack.c.bf16 %v3651_v62, %v1814_v61 }
 0x515   : > { %3776 = vmatprep.subr.bf16.mxu1 %v3775_v1  ;;  %3692 = vmatmul.mubr.msk.f32.vlgmr.msra.gmra.mrb[18].mxu0 %vm1063_vm12, %v4542_v13 }
 0x516   : > { %3788 = vmatprep.subr.bf16.mxu0 %v3787_v2  ;;  %3778 = vmatpush3.bf16.msra.mxu1 %v3775_v1 }
 0x517   : > { %3790 = vmatpush3.bf16.msra.mxu0 %v3787_v2  ;;  %3705 = vmatprep.mubr.msk.f32.mxu0 %vm1063_vm12, %v4552_v22 }
 0x519   : > { %v3644_v17 = vpop.f32.mrb[6].mxu1  ;;  %3685 = vmatmul.mubr.msk.f32.vlgmr.msra.gmra.mrb[12].mxu1 %vm1063_vm12, %v4566_v25 }
 0x51a   : > { %3706 = vmatmul.mubr.msk.f32.vlgmr.msra.gmra.mrb[20].mxu0 %vm1063_vm12, %v4562_v24  ;;  %v1701_v4 = vpop.f32.mrb[7].mxu1  ;;  %3698 = vmatprep.mubr.msk.f32.mxu1 %vm1063_vm12, %v4572_v26 }
 0x51b   : > { %v3783_v5 = vpack.c.bf16 %v3644_v17, %v1701_v4  ;;  %3145 = vmatprep.mubr.bf16.mxu0 %v4138_v3 }
 0x51d   : > { %3784 = vmatprep.subr.bf16.mxu1 %v3783_v5 }
 0x51e   : > { %3786 = vmatpush3.bf16.msra.mxu1 %v3783_v5 }
 0x521   : > { %v3658_v6 = vpop.f32.mrb[8].mxu1  ;;  %3699 = vmatmul.mubr.msk.f32.vlgmr.msra.gmra.mrb[14].mxu1 %vm1063_vm12, %v4577_v27 }
 0x522   : > { %v1927_v9 = vpop.f32.mrb[9].mxu1  ;;  %3712 = vmatprep.mubr.msk.f32.mxu1 %vm1063_vm12, %v4582_v28 }
 0x523   : > { %v3791_v10 = vpack.c.bf16 %v3658_v6, %v1927_v9 }
 0x525   : > { %3792 = vmatprep.subr.bf16.mxu1 %v3791_v10 }
 0x526   : > { %3794 = vmatpush3.bf16.msra.mxu1 %v3791_v10 }
 0x529   : > { %3713 = vmatmul.mubr.msk.f32.vlgmr.msra.gmra.mrb[16].mxu1 %vm1063_vm12, %v4587_v29 }
 0x52a   : > { %3369 = vmatprep.mubr.bf16.mxu1 %v4138_v3 }
 0x5dc   : > { %v3665_v11 = vpop.f32.mrb[14].mxu0 }
 0x5dd   : > { %v2008_v12 = vpop.f32.mrb[15].mxu0 }
 0x5e0   : > { %v3672_v14 = vpop.f32.mrb[10].mxu1 }
 0x5e1   : > { %v2089_v19 = vpop.f32.mrb[11].mxu1 }
 0x5e4   : > { %v3679_v15 = vpop.f32.mrb[16].mxu0 }
 0x5e5   : > { %v2720_v20 = vcombine.low %v3665_v11, %v3679_v15  ;;  %v2721_v48 = vcombine.high %v3665_v11, %v3679_v15  ;;  %v2170_v47 = vpop.f32.mrb[17].mxu0 }
 0x5e6   : > { %v2584_v16 = vcombine.low %v2008_v12, %v2170_v47  ;;  %v2585_v13 = vcombine.high %v2008_v12, %v2170_v47 }
 0x5e7   : > { %v2728_v24 = vrot.slane %v2720_v20, %v4429_v31  ;;  %v2735_v25 = vrot.slane %v2721_v48, %v4429_v31 }
 0x5e8   : > { %v3693_v21 = vpop.f32.mrb[18].mxu0  ;;  %v2592_v39 = vrot.slane %v2584_v16, %v4429_v31  ;;  %v2599_v7 = vrot.slane %v2585_v13, %v4429_v31 }
 0x5e9   : > { %v2332_v22 = vpop.f32.mrb[19].mxu0 }
 0x5ec   : > { %v3686_v23 = vpop.f32.mrb[12].mxu1 }
 0x5ed   : > { %v2736_v26 = vcombine.low %v3672_v14, %v3686_v23  ;;  %v2737_v27 = vcombine.high %v3672_v14, %v3686_v23  ;;  %v3707_v3 = vpop.f32.mrb[20].mxu0  ;;  %v2251_v28 = vpop.f32.mrb[13].mxu1 }
 0x5ee   : > { %v2752_v29 = vcombine.low %v3693_v21, %v3707_v3  ;;  %v2753_v30 = vcombine.high %v3693_v21, %v3707_v3  ;;  %v2600_v32 = vcombine.low %v2089_v19, %v2251_v28  ;;  %v2601_v33 = vcombine.high %v2089_v19, %v2251_v28  ;;  %v2494_v34 = vpop.f32.mrb[21].mxu0 }
 0x5ef   : > { %v2744_v35 = vrot.slane %v2736_v26, %v4429_v31  ;;  %v2751_v36 = vrot.slane %v2737_v27, %v4429_v31  ;;  %v2616_v37 = vcombine.low %v2332_v22, %v2494_v34  ;;  %v2617_v38 = vcombine.high %v2332_v22, %v2494_v34 }
 0x5f0   : > { %v2608_v40 = vrot.slane %v2600_v32, %v4429_v31  ;;  %v2615_v41 = vrot.slane %v2601_v33, %v4429_v31  ;;  %v2760_v57 = vrot.slane %v2752_v29, %v4429_v31  ;;  %v2767_v51 = vrot.slane %v2753_v30, %v4429_v31 }
 0x5f1   : > { %v2784_v42 = vcombine.low %v2728_v24, %v2744_v35  ;;  %v2785_v43 = vcombine.high %v2728_v24, %v2744_v35  ;;  %v2800_v44 = vcombine.low %v2735_v25, %v2751_v36  ;;  %v2801_v45 = vcombine.high %v2735_v25, %v2751_v36 }
 0x5f2   : > { %v2648_v52 = vcombine.low %v2592_v39, %v2608_v40  ;;  %v2649_v46 = vcombine.high %v2592_v39, %v2608_v40  ;;  %v2664_v49 = vcombine.low %v2599_v7, %v2615_v41  ;;  %v2665_v50 = vcombine.high %v2599_v7, %v2615_v41 }
 0x5f3   : > { %v4672_v55 = vrot.slane %v2784_v42, %v4434_v18  ;;  %v2799_v56 = vrot.slane %v2785_v43, %v4434_v18  ;;  %v2808_v59 = vrot.slane %v2800_v44, %v4434_v18  ;;  %v2815_v60 = vrot.slane %v2801_v45, %v4434_v18 }
 0x5f4   : > { %v3700_v53 = vpop.f32.mrb[14].mxu1  ;;  %v4680_v1 = vrot.slane %v2648_v52, %v4434_v18  ;;  %v2663_v2 = vrot.slane %v2649_v46, %v4434_v18  ;;  %v2672_v5 = vrot.slane %v2664_v49, %v4434_v18  ;;  %v2679_v6 = vrot.slane %v2665_v50, %v4434_v18 }
 0x5f5   : > { %v2413_v54 = vpop.f32.mrb[15].mxu1  ;;  %v2624_v11 = vrot.slane %v2616_v37, %v4429_v31  ;;  %v2631_v12 = vrot.slane %v2617_v38, %v4429_v31 }
 0x5fc   : > { %v3714_v58 = vpop.f32.mrb[16].mxu1 }
 0x5fd   : > { %v2768_v62 = vcombine.low %v3700_v53, %v3714_v58  ;;  %v2769_v63 = vcombine.high %v3700_v53, %v3714_v58  ;;  %v2575_v61 = vpop.f32.mrb[17].mxu1 }
 0x5fe   : > { %v2632_v17 = vcombine.low %v2413_v54, %v2575_v61  ;;  %v2633_v4 = vcombine.high %v2413_v54, %v2575_v61 }
 0x5ff   : > { %v2776_v9 = vrot.slane %v2768_v62, %v4429_v31  ;;  %v2783_v10 = vrot.slane %v2769_v63, %v4429_v31 }
 0x600   : > { %v2640_v14 = vrot.slane %v2632_v17, %v4429_v31  ;;  %v2647_v19 = vrot.slane %v2633_v4, %v4429_v31 }
 0x601   : > { %v2816_v15 = vcombine.low %v2760_v57, %v2776_v9  ;;  %v2817_v20 = vcombine.high %v2760_v57, %v2776_v9  ;;  %v2832_v48 = vcombine.low %v2767_v51, %v2783_v10  ;;  %v2833_v47 = vcombine.high %v2767_v51, %v2783_v10 }
 0x602   : > { %v2680_v16 = vcombine.low %v2624_v11, %v2640_v14  ;;  %v2681_v13 = vcombine.high %v2624_v11, %v2640_v14  ;;  %v2696_v21 = vcombine.low %v2631_v12, %v2647_v19  ;;  %v2697_v22 = vcombine.high %v2631_v12, %v2647_v19 }
 0x603   : > { %v2824_v23 = vrot.slane %v2816_v15, %v4434_v18  ;;  %v2831_v24 = vrot.slane %v2817_v20, %v4434_v18  ;;  %v2840_v25 = vrot.slane %v2832_v48, %v4434_v18  ;;  %v2847_v26 = vrot.slane %v2833_v47, %v4434_v18 }
 0x604   : > { %v2688_v27 = vrot.slane %v2680_v16, %v4434_v18  ;;  %v2695_v31 = vrot.slane %v2681_v13, %v4434_v18  ;;  %v2704_v3 = vrot.slane %v2696_v21, %v4434_v18  ;;  %v2711_v28 = vrot.slane %v2697_v22, %v4434_v18 }
 0x605   : > { %v2848_v29 = vcombine.low %v4672_v55, %v2824_v23  ;;  %v2850_v30 = vcombine.low %v2799_v56, %v2831_v24  ;;  %v2849_v32 = vcombine.high %v4672_v55, %v2824_v23  ;;  %v2855_v33 = vcombine.high %v2815_v60, %v2847_v26 }
 0x606   : > { %v2712_v34 = vcombine.low %v4680_v1, %v2688_v27  ;;  %v2714_v35 = vcombine.low %v2663_v2, %v2695_v31  ;;  %v2713_v36 = vcombine.high %v4680_v1, %v2688_v27  ;;  %v2719_v37 = vcombine.high %v2679_v6, %v2711_v28 }
 0x607   : > { %v2715_v38 = vcombine.high %v2663_v2, %v2695_v31  ;;  %v2851_v39 = vcombine.high %v2799_v56, %v2831_v24  ;;  %v2716_v7 = vcombine.low %v2672_v5, %v2704_v3  ;;  %v2852_v40 = vcombine.low %v2808_v59, %v2840_v25  ;;  %v4056_v31 = vld [vmem:[%s4898_s3] sm:$0xff]  }
 0x608   : > { %v3937_v41 = vpack.i.bf16 %v2850_v30, %v2714_v35  ;;  %v3932_v42 = vpack.i.bf16 %v2849_v32, %v2713_v36  ;;  %v3962_v43 = vpack.i.bf16 %v2855_v33, %v2719_v37  ;;  %v2717_v18 = vcombine.high %v2672_v5, %v2704_v3  ;;  %v4057_v3 = vld [vmem:[%s4898_s3 + $0x8] sm:$0xff]   ;;  %v4060_v30 = vld [vmem:[%s4898_s3 + $0x20] sm:$0x1f]  }
 0x609   : > { %v3942_v44 = vpack.i.bf16 %v2851_v39, %v2715_v38  ;;  %v3947_v45 = vpack.i.bf16 %v2852_v40, %v2716_v7  ;;  %v2853_v52 = vcombine.high %v2808_v59, %v2840_v25  ;;  %v2718_v46 = vcombine.low %v2679_v6, %v2711_v28  ;;  %v4058_v28 = vld [vmem:[%s4898_s3 + $0x10] sm:$0xff]  }
 0x60a   : > { %3938 = vrot.lane.b32.xlu0 %v3937_v41, %s4144_s23  ;;  %3933 = vrot.lane.b32.xlu1 %v3932_v42, %s4141_s17  ;;  %v2854_v49 = vcombine.low %v2815_v60, %v2847_v26  ;;  %s216_s17 = sand.u32 1, %s4120_s19  }
 0x60b   : > { %v3952_v50 = vpack.i.bf16 %v2853_v52, %v2717_v18 }
 0x60c   : > { %v3957_v53 = vpack.i.bf16 %v2854_v49, %v2718_v46 }
 0x60e   : > { %3963 = vrot.lane.b32.xlu0 %v3962_v43, %s4131_s11  ;;  %3943 = vrot.lane.b32.xlu1 %v3942_v44, %s4140_s15 }
 0x612   : > { %3948 = vrot.lane.b32.xlu1 %v3947_v45, %s4143_s9  ;;  %s3538_s9 = sshll.u32 %s4199_s22, 8  ;;  %s3383_s22 = scalar_lea.sflag [#allocation3], %s216_s17 }
 0x613   : > { %s4853_s6 = scalar_lea.hbm %s4900_s5, %s3538_s9 }
 0x616   : > { %3953 = vrot.lane.b32.xlu1 %v3952_v50, %s4142_s8  ;;  %s3460_s8 = sshll.u32 %s216_s17, 4 }
 0x617   : > { %s218_s23 = scalar_lea.vmem [#allocation2], %s3460_s8 }
 0x61a   : > { %3958 = vrot.lane.b32.xlu1 %v3957_v53, %s4906_s14 }
 0x67c   : > { %v3934_v54 = vpop.permute.xlu1 %3933  ;;  %v3939_v56 = vpop.permute.xlu0 %3938 }
 0x67d   : > { %v3936_v57 = vunpack.i.h.bf16 %v3934_v54  ;;  %v3935_v51 = vunpack.i.l.bf16 %v3934_v54  ;;  %v3941_v59 = vunpack.i.h.bf16 %v3939_v56  ;;  %v3940_v60 = vunpack.i.l.bf16 %v3939_v56 }
 0x67f   : > { %v2925_v62 = vsel %vm1063_vm12, %v2848_v29, %v3936_v57  ;;  %v2912_v63 = vsel %vm1063_vm12, %v2712_v34, %v3935_v51  ;;  %v4059_v29 = vld [vmem:[%s4898_s3 + $0x18] sm:$0xff]  }
 0x680   : > { %v3944_v55 = vpop.permute.xlu1 %3943  ;;  %v3964_v9 = vpop.permute.xlu0 %3963  ;;  %v2914_v10 = vsel %vm2913_vm13, %v2912_v63, %v3940_v60  ;;  %v2926_v11 = vsel %vm2913_vm13, %v2925_v62, %v3941_v59 }
 0x681   : > { %v3946_v61 = vunpack.i.h.bf16 %v3944_v55  ;;  %v3945_v1 = vunpack.i.l.bf16 %v3944_v55  ;;  %v3966_v16 = vunpack.i.h.bf16 %v3964_v9  ;;  %v3965_v13 = vunpack.i.l.bf16 %v3964_v9 }
 0x683   : > { %v2916_v12 = vsel %vm2915_vm15, %v2914_v10, %v3945_v1  ;;  %v2927_v14 = vsel %vm2915_vm15, %v2926_v11, %v3946_v61 }
 0x684   : > { %v3949_v58 = vpop.permute.xlu1 %3948 }
 0x685   : > { %v3951_v17 = vunpack.i.h.bf16 %v3949_v58  ;;  %v3950_v4 = vunpack.i.l.bf16 %v3949_v58 }
 0x687   : > { %v2918_v15 = vsel %vm2917_vm5, %v2916_v12, %v3950_v4  ;;  %v2928_v20 = vsel %vm2917_vm5, %v2927_v14, %v3951_v17 }
 0x688   : > { %v3954_v2 = vpop.permute.xlu1 %3953 }
 0x689   : > { %v3956_v5 = vunpack.i.h.bf16 %v3954_v2  ;;  %v3955_v6 = vunpack.i.l.bf16 %v3954_v2 }
 0x68b   : > { %v2920_v21 = vsel %vm2919_vm9, %v2918_v15, %v3955_v6  ;;  %v2929_v22 = vsel %vm2919_vm9, %v2928_v20, %v3956_v5 }
 0x68c   : > { %v3959_v19 = vpop.permute.xlu1 %3958 }
 0x68d   : > { %v3961_v48 = vunpack.i.h.bf16 %v3959_v19  ;;  %v3960_v47 = vunpack.i.l.bf16 %v3959_v19 }
 0x68f   : > { %v2922_v23 = vsel %vm2921_vm11, %v2920_v21, %v3960_v47  ;;  %v2930_v24 = vsel %vm2921_vm11, %v2929_v22, %v3961_v48 }
 0x690   : > { %v2924_v25 = vsel %vm2923_vm14, %v2922_v23, %v3965_v13  ;;  %v2931_v26 = vsel %vm2923_vm14, %v2930_v24, %v3966_v16  ;;  %vm4916_vm14 = vcmask 596992  }
 0x691   : > { %v3972_v27 = vpack.i.bf16 %v2931_v26, %v2924_v25  ;;  %v2933_v53 = vpack.c.bf16 %v2931_v26, %v2931_v26  ;;  %v2932_v63 = vpack.c.bf16 %v2924_v25, %v2924_v25 }
 0x693   : > { %3973 = vrot.lane.b32.xlu0 %v3972_v27, %s4131_s11  ;;  %3968 = vrot.lane.b32.xlu1 %v3972_v27, %s4130_s10 }
 0x697   : > { %3983 = vrot.lane.b32.xlu0 %v3972_v27, %s4133_s13  ;;  %3978 = vrot.lane.b32.xlu1 %v3972_v27, %s4132_s12 }
 0x69b   : > { %3993 = vrot.lane.b32.xlu0 %v3972_v27, %s4907_s16  ;;  %3988 = vrot.lane.b32.xlu1 %v3972_v27, %s4914_s25  ;;  %s4918_s16 = smov 96  }
 0x69f   : > { %4003 = vrot.lane.b32.xlu0 %v3972_v27, %s4915_s26  ;;  %3998 = vrot.lane.b32.xlu1 %v3972_v27, %s4906_s14  ;;  %s4917_s14 = smov 95  }
 0x6c2   : > { %3090 = vxpose.xlu1.c.b16.start [1/5] (short) (narrow) %v4056_v31, 16 }
 0x6c6   : > { %3091 = vxpose.xlu1.c.b16.cont [2/5] (short) (narrow) %v4057_v3, 16 }
 0x6ca   : > { %3092 = vxpose.xlu1.c.b16.cont [3/5] (short) (narrow) %v4058_v28, 16 }
 0x6ce   : > { %3093 = vxpose.xlu1.c.b16.cont [4/5] (short) (narrow) %v4059_v29, 16 }
 0x6d2   : > { %3094 = vxpose.xlu1.c.b16.end [5/5] (short) (narrow) %v4060_v30, 16 }
 0x705   : > { %v3974_v32 = vpop.permute.xlu0 %3973  ;;  %v3969_v33 = vpop.permute.xlu1 %3968 }
 0x706   : > { %v3976_v34 = vunpack.i.h.bf16 %v3974_v32  ;;  %v3975_v35 = vunpack.i.l.bf16 %v3974_v32  ;;  %v3971_v36 = vunpack.i.h.bf16 %v3969_v33  ;;  %v3970_v37 = vunpack.i.l.bf16 %v3969_v33 }
 0x708   : > { %v2955_v38 = vsel %vm258_vm4, %v3976_v34, %v3975_v35  ;;  %v2938_v39 = vsel %vm240_vm0, %v3970_v37, %v3971_v36  ;;  %v2939_v7 = vsel %vm240_vm0, %v3971_v36, %v3970_v37  ;;  %v2954_v40 = vsel %vm258_vm4, %v3975_v35, %v3976_v34 }
 0x709   : > { %v2957_v41 = vpack.c.bf16 %v2955_v38, %v2955_v38  ;;  %v2940_v42 = vpack.c.bf16 %v2938_v39, %v2938_v39  ;;  %v2941_v43 = vpack.c.bf16 %v2939_v7, %v2939_v7  ;;  %v3984_v18 = vpop.permute.xlu0 %3983  ;;  %v3979_v44 = vpop.permute.xlu1 %3978  ;;  %v2956_v55 = vpack.c.bf16 %v2954_v40, %v2954_v40 }
 0x70a   : > { %v3986_v45 = vunpack.i.h.bf16 %v3984_v18  ;;  %v3985_v52 = vunpack.i.l.bf16 %v3984_v18  ;;  %v3981_v46 = vunpack.i.h.bf16 %v3979_v44  ;;  %v3980_v49 = vunpack.i.l.bf16 %v3979_v44 }
 0x70b   : > { %v3000_v50 = vrot.slane %v2940_v42, 4  ;;  %v3001_v54 = vrot.slane %v2941_v43, 4  ;;  %v3005_v61 = vrot.slane %v2957_v41, 4  ;;  %v3004_v11 = vrot.slane %v2956_v55, 4 }
 0x70c   : > { %v2971_v56 = vsel %vm276_vm2, %v3986_v45, %v3985_v52  ;;  %v2946_v57 = vsel %vm249_vm1, %v3980_v49, %v3981_v46  ;;  %v2947_v51 = vsel %vm249_vm1, %v3981_v46, %v3980_v49  ;;  %v2970_v58 = vsel %vm276_vm2, %v3985_v52, %v3986_v45 }
 0x70d   : > { %v3994_v59 = vpop.permute.xlu0 %3993  ;;  %v3989_v60 = vpop.permute.xlu1 %3988  ;;  %v3020_v62 = vsel %vm339_vm7, %v2933_v53, %v3001_v54  ;;  %v2973_v5 = vpack.c.bf16 %v2971_v56, %v2971_v56  ;;  %v2948_v6 = vpack.c.bf16 %v2946_v57, %v2946_v57  ;;  %v3016_v9 = vsel %vm339_vm7, %v2932_v63, %v3000_v50  ;;  %v4061_v57 = vld [vmem:[%s4899_s4] sm:$0xff]  }
 0x70e   : > { %v3996_v1 = vunpack.i.h.bf16 %v3994_v59  ;;  %v3995_v2 = vunpack.i.l.bf16 %v3994_v59  ;;  %v3991_v17 = vunpack.i.h.bf16 %v3989_v60  ;;  %v3990_v4 = vunpack.i.l.bf16 %v3989_v60  ;;  %3113 = vmatprep.subr.bf16.mxu0 %v3020_v62  ;;  %v4064_v59 = vld [vmem:[%s4899_s4 + $0x18] sm:$0xff]   ;;  %v4065_v60 = vld [vmem:[%s4899_s4 + $0x20] sm:$0x1f]  }
 0x70f   : > { %v2949_v10 = vpack.c.bf16 %v2947_v51, %v2947_v51  ;;  %3114 = vmatpush1.bf16.msra.mxu0 %v3016_v9  ;;  %v2972_v15 = vpack.c.bf16 %v2970_v58, %v2970_v58  ;;  %v3024_v26 = vsel %vm339_vm7, %v2948_v6, %v3004_v11  ;;  %v3009_v31 = vrot.slane %v2973_v5, 4  ;;  %v4062_v51 = vld [vmem:[%s4899_s4 + $0x8] sm:$0xff]   ;;  %v4063_v58 = vld [vmem:[%s4899_s4 + $0x10] sm:$0xff]  }
 0x710   : > { %v2987_v12 = vsel %vm294_vm8, %v3996_v1, %v3995_v2  ;;  %v2962_v14 = vsel %vm267_vm6, %v3990_v4, %v3991_v17  ;;  %v2963_v19 = vsel %vm267_vm6, %v3991_v17, %v3990_v4  ;;  %v2986_v20 = vsel %vm294_vm8, %v3995_v2, %v3996_v1 }
 0x711   : > { %v2989_v48 = vpack.c.bf16 %v2987_v12, %v2987_v12  ;;  %v3028_v47 = vsel %vm339_vm7, %v2949_v10, %v3005_v61  ;;  %v4004_v16 = vpop.permute.xlu0 %4003  ;;  %v3999_v13 = vpop.permute.xlu1 %3998  ;;  %v2964_v25 = vpack.c.bf16 %v2962_v14, %v2962_v14  ;;  %v2965_v27 = vpack.c.bf16 %v2963_v19, %v2963_v19 }
 0x712   : > { %3115 = vmatprep.subr.bf16.mxu0 %v3028_v47  ;;  %v4006_v21 = vunpack.i.h.bf16 %v4004_v16  ;;  %v4005_v22 = vunpack.i.l.bf16 %v4004_v16  ;;  %v4001_v23 = vunpack.i.h.bf16 %v3999_v13  ;;  %v4000_v24 = vunpack.i.l.bf16 %v3999_v13 }
 0x713   : > { %3116 = vmatpush1.bf16.msra.mxu0 %v3024_v26  ;;  %v3008_v32 = vrot.slane %v2972_v15, 4  ;;  %v2988_v33 = vpack.c.bf16 %v2986_v20, %v2986_v20  ;;  %v3036_v35 = vsel %vm339_vm7, %v2965_v27, %v3009_v31  ;;  %v3013_v37 = vrot.slane %v2989_v48, 4 }
 0x714   : > { %v2994_v3 = vsel %vm303_vm10, %v4005_v22, %v4006_v21  ;;  %v2995_v28 = vsel %vm303_vm10, %v4006_v21, %v4005_v22  ;;  %v2978_v29 = vsel %vm285_vm3, %v4000_v24, %v4001_v23  ;;  %v2979_v30 = vsel %vm285_vm3, %v4001_v23, %v4000_v24  ;;  %3117 = vmatprep.subr.bf16.mxu0 %v3036_v35 }
 0x715   : > { %v2997_v34 = vpack.c.bf16 %v2995_v28, %v2995_v28  ;;  %v2981_v36 = vpack.c.bf16 %v2979_v30, %v2979_v30  ;;  %v2996_v38 = vpack.c.bf16 %v2994_v3, %v2994_v3  ;;  %v2980_v39 = vpack.c.bf16 %v2978_v29, %v2978_v29 }
 0x716   : > { %v3032_v7 = vsel %vm339_vm7, %v2964_v25, %v3008_v32  ;;  %v3012_v42 = vrot.slane %v2988_v33, 4 }
 0x717   : > { %3118 = vmatpush1.bf16.msra.mxu0 %v3032_v7  ;;  %v3044_v40 = vsel %vm339_vm7, %v2981_v36, %v3013_v37  ;;  %v3049_v41 = vsel %vm339_vm7, %v2997_v34, 1065369472  ;;  %v3047_v44 = vsel %vm339_vm7, %v2996_v38, 1065369472 }
 0x718   : > { %3119 = vmatprep.subr.bf16.mxu0 %v3044_v40  ;;  %v3040_v43 = vsel %vm339_vm7, %v2980_v39, %v3012_v42  ;;  %v3111_v18 = vand.u32 %v3049_v41, %v4389_v0  ;;  %v3109_v45 = vand.u32 %v3047_v44, %v4389_v0 }
 0x71b   : > { %3120 = vmatpush1.bf16.msra.mxu0 %v3040_v43 }
 0x71c   : > { %3121 = vmatprep.subr.bf16.mxu0 %v3111_v18 }
 0x71f   : > { %3122 = vmatpush1.bf16.msra.mxu0 %v3109_v45 }
 0x728   : > { %v3098_v52 = vpop.trf.xlu1 }
 0x729   : > { %3526 = vmatmul.mubr.msk.bf16.vlgmr.msra.gmra.mrb[24].mxu0 %vm4916_vm14, %v3098_v52 }
 0x7fc   : > { %v3147_v46 = vpop.f32.mrb[24].mxu0 }
 0x7fd   : > { %v3154_v49 = vmax.f32 %v3147_v46, 0.0  ;;  %v3149_v50 = vpop.f32.mrb[25].mxu0 }
 0x7fe   : > { %v3155_v53 = vmax.f32 %v3149_v50, 0.0  ;;  %v3151_v54 = vpop.f32.mrb[26].mxu0 }
 0x7ff   : > { %v3152_v55 = vpop.f32.mrb[27].mxu0  ;;  %v3156_v14 = vpack.c.bf16 %v3154_v49, %v3154_v49 }
 0x800   : > { %v4007_v56 = vpack.i.bf16 %v3155_v53, %v3154_v49  ;;  %v3157_v11 = vpack.c.bf16 %v3155_v53, %v3155_v53 }
 0x802   : > { %4008 = vrot.lane.b32.xlu0 %v4007_v56, %s4130_s10 }
 0x806   : > { %4013 = vrot.lane.b32.xlu0 %v4007_v56, %s4131_s11  ;;  %s4070_s11 = sshll.u32 %s4147_s7, 4  ;;  %s4071_s11 = int_to_ptr.vmem [resolvable:$false] %s4070_s11 }
 0x80a   : > { %4018 = vrot.lane.b32.xlu0 %v4007_v56, %s4132_s12  ;;  %s4072_s12 = scalar_lea.vmem %s4071_s11, 512 }
 0x80e   : > { %4023 = vrot.lane.b32.xlu0 %v4007_v56, %s4133_s13 }
 0x812   : > { %4028 = vrot.lane.b32.xlu0 %v4007_v56, %s4914_s25 }
 0x816   : > { %4033 = vrot.lane.b32.xlu0 %v4007_v56, %s4917_s14  ;;  %s3397_s14 = sshll.u32 %s218_s23, 4  ;;  %s4855_s14 = int_to_ptr.vmem [resolvable:$true] %s3397_s14 }
 0x817   : > { %s4066_s10 = scalar_lea.vmem %s4855_s14, 256  ;;  %p4073_p0 = scmp.lt.s32.totalorder %s4855_s14, %s4071_s11 }
 0x818   : > { %p4067_p11 = scmp.ne.s32.totalorder %s4855_s14, %s4066_s10  ;;  %p4074_p1 = scmp.lt.s32.totalorder %s4072_s12, %s4066_s10 }
 0x81a   : > { %4038 = vrot.lane.b32.xlu0 %v4007_v56, %s4918_s16  ;;  %p4068_p12 = pnand %p4067_p11, %p4216_p5  ;;  %p4075_p2 = por %p4074_p1, %p4073_p0 }
 0x81c   : > { %p4069_p13 = pneg %p4068_p12 }
 0x81e   : > { %4043 = vrot.lane.b32.xlu0 %v4007_v56, %s4915_s26  ;;  %p4076_p3 = pnand %p4075_p2, %p4069_p13 }
 0x83c   : > { %3314 = vxpose.xlu0.c.b16.start [1/5] (short) (narrow) %v4061_v57, 16 }
 0x840   : > { %3315 = vxpose.xlu0.c.b16.cont [2/5] (short) (narrow) %v4062_v51, 16 }
 0x844   : > { %3316 = vxpose.xlu0.c.b16.cont [3/5] (short) (narrow) %v4063_v58, 16 }
 0x848   : > { %3317 = vxpose.xlu0.c.b16.cont [4/5] (short) (narrow) %v4064_v59, 16 }
 0x84c   : > { %3318 = vxpose.xlu0.c.b16.end [5/5] (short) (narrow) %v4065_v60, 16 }
 0x874   : > { %v4009_v62 = vpop.permute.xlu0 %4008 }
 0x875   : > { %v4011_v63 = vunpack.i.h.bf16 %v4009_v62  ;;  %v4010_v61 = vunpack.i.l.bf16 %v4009_v62 }
 0x877   : > { %v3162_v1 = vsel %vm240_vm0, %v4010_v61, %v4011_v63  ;;  %v3163_v2 = vsel %vm240_vm0, %v4011_v63, %v4010_v61  ;;  %vm4919_vm0 = vmmov %vm4916_vm14 }
 0x878   : > { %v3164_v17 = vpack.c.bf16 %v3162_v1, %v3162_v1  ;;  %v3165_v4 = vpack.c.bf16 %v3163_v2, %v3163_v2  ;;  %v4014_v5 = vpop.permute.xlu0 %4013 }
 0x879   : > { %v4016_v6 = vunpack.i.h.bf16 %v4014_v5  ;;  %v4015_v9 = vunpack.i.l.bf16 %v4014_v5 }
 0x87a   : > { %v3224_v10 = vrot.slane %v3164_v17, 4  ;;  %v3225_v12 = vrot.slane %v3165_v4, 4 }
 0x87b   : > { %v3178_v19 = vsel %vm258_vm4, %v4015_v9, %v4016_v6  ;;  %v3179_v15 = vsel %vm258_vm4, %v4016_v6, %v4015_v9 }
 0x87c   : > { %v3180_v20 = vpack.c.bf16 %v3178_v19, %v3178_v19  ;;  %v3181_v48 = vpack.c.bf16 %v3179_v15, %v3179_v15  ;;  %v4019_v47 = vpop.permute.xlu0 %4018  ;;  %v3244_v16 = vsel %vm339_vm7, %v3157_v11, %v3225_v12  ;;  %v3240_v13 = vsel %vm339_vm7, %v3156_v14, %v3224_v10 }
 0x87d   : > { %v4021_v21 = vunpack.i.h.bf16 %v4019_v47  ;;  %v4020_v22 = vunpack.i.l.bf16 %v4019_v47  ;;  %3337 = vmatprep.subr.bf16.mxu1 %v3244_v16 }
 0x87e   : > { %3338 = vmatpush1.bf16.msra.mxu1 %v3240_v13  ;;  %v3228_v25 = vrot.slane %v3180_v20, 4  ;;  %v3229_v3 = vrot.slane %v3181_v48, 4 }
 0x87f   : > { %v3170_v23 = vsel %vm249_vm1, %v4020_v22, %v4021_v21  ;;  %v3171_v24 = vsel %vm249_vm1, %v4021_v21, %v4020_v22 }
 0x880   : > { %v3172_v26 = vpack.c.bf16 %v3170_v23, %v3170_v23  ;;  %v4024_v27 = vpop.permute.xlu0 %4023  ;;  %v3173_v31 = vpack.c.bf16 %v3171_v24, %v3171_v24 }
 0x881   : > { %v4026_v28 = vunpack.i.h.bf16 %v4024_v27  ;;  %v4025_v29 = vunpack.i.l.bf16 %v4024_v27 }
 0x882   : > { %v3252_v30 = vsel %vm339_vm7, %v3173_v31, %v3229_v3  ;;  %v3248_v32 = vsel %vm339_vm7, %v3172_v26, %v3228_v25 }
 0x883   : > { %v3194_v33 = vsel %vm276_vm2, %v4025_v29, %v4026_v28  ;;  %v3195_v34 = vsel %vm276_vm2, %v4026_v28, %v4025_v29  ;;  %3339 = vmatprep.subr.bf16.mxu1 %v3252_v30 }
 0x884   : > { %v3196_v35 = vpack.c.bf16 %v3194_v33, %v3194_v33  ;;  %v3197_v36 = vpack.c.bf16 %v3195_v34, %v3195_v34  ;;  %v4029_v37 = vpop.permute.xlu0 %4028  ;;  %3340 = vmatpush1.bf16.msra.mxu1 %v3248_v32 }
 0x885   : > { %v4031_v38 = vunpack.i.h.bf16 %v4029_v37  ;;  %v4030_v39 = vunpack.i.l.bf16 %v4029_v37 }
 0x886   : > { %v3232_v41 = vrot.slane %v3196_v35, 4  ;;  %v3233_v44 = vrot.slane %v3197_v36, 4 }
 0x887   : > { %v3186_v7 = vsel %vm267_vm6, %v4030_v39, %v4031_v38  ;;  %v3187_v40 = vsel %vm267_vm6, %v4031_v38, %v4030_v39 }
 0x888   : > { %v3188_v42 = vpack.c.bf16 %v3186_v7, %v3186_v7  ;;  %v4034_v43 = vpop.permute.xlu0 %4033  ;;  %v3189_v18 = vpack.c.bf16 %v3187_v40, %v3187_v40 }
 0x889   : > { %v4036_v45 = vunpack.i.h.bf16 %v4034_v43  ;;  %v4035_v52 = vunpack.i.l.bf16 %v4034_v43 }
 0x88a   : > { %v3260_v46 = vsel %vm339_vm7, %v3189_v18, %v3233_v44  ;;  %v3256_v49 = vsel %vm339_vm7, %v3188_v42, %v3232_v41 }
 0x88b   : > { %v3210_v50 = vsel %vm294_vm8, %v4035_v52, %v4036_v45  ;;  %v3211_v53 = vsel %vm294_vm8, %v4036_v45, %v4035_v52  ;;  %3341 = vmatprep.subr.bf16.mxu1 %v3260_v46 }
 0x88c   : > { %v3212_v54 = vpack.c.bf16 %v3210_v50, %v3210_v50  ;;  %v3213_v55 = vpack.c.bf16 %v3211_v53, %v3211_v53  ;;  %v4039_v56 = vpop.permute.xlu0 %4038  ;;  %3342 = vmatpush1.bf16.msra.mxu1 %v3256_v49 }
 0x88d   : > { %v4041_v57 = vunpack.i.h.bf16 %v4039_v56  ;;  %v4040_v51 = vunpack.i.l.bf16 %v4039_v56 }
 0x88e   : > { %v3236_v60 = vrot.slane %v3212_v54, 4  ;;  %v3237_v1 = vrot.slane %v3213_v55, 4 }
 0x88f   : > { %v3202_v58 = vsel %vm285_vm3, %v4040_v51, %v4041_v57  ;;  %v3203_v59 = vsel %vm285_vm3, %v4041_v57, %v4040_v51 }
 0x890   : > { %v3204_v62 = vpack.c.bf16 %v3202_v58, %v3202_v58  ;;  %v4044_v63 = vpop.permute.xlu0 %4043  ;;  %v3205_v61 = vpack.c.bf16 %v3203_v59, %v3203_v59 }
 0x891   : > { %v4046_v2 = vunpack.i.h.bf16 %v4044_v63  ;;  %v4045_v17 = vunpack.i.l.bf16 %v4044_v63 }
 0x892   : > { %v3268_v4 = vsel %vm339_vm7, %v3205_v61, %v3237_v1  ;;  %v3264_v5 = vsel %vm339_vm7, %v3204_v62, %v3236_v60 }
 0x893   : > { %v3218_v6 = vsel %vm303_vm10, %v4045_v17, %v4046_v2  ;;  %v3219_v9 = vsel %vm303_vm10, %v4046_v2, %v4045_v17  ;;  %3343 = vmatprep.subr.bf16.mxu1 %v3268_v4 }
 0x894   : > { %v3220_v10 = vpack.c.bf16 %v3218_v6, %v3218_v6  ;;  %v3221_v11 = vpack.c.bf16 %v3219_v9, %v3219_v9  ;;  %3344 = vmatpush1.bf16.msra.mxu1 %v3264_v5 }
 0x896   : > { %v3273_v12 = vsel %vm339_vm7, %v3221_v11, 1065369472  ;;  %v3271_v14 = vsel %vm339_vm7, %v3220_v10, 1065369472 }
 0x897   : > { %v3335_v19 = vand.u32 %v3273_v12, %v4389_v0  ;;  %v3333_v15 = vand.u32 %v3271_v14, %v4389_v0 }
 0x899   : > { %3345 = vmatprep.subr.bf16.mxu1 %v3335_v19 }
 0x89a   : > { %3346 = vmatpush1.bf16.msra.mxu1 %v3333_v15 }
 0x8a2   : > { %v3322_v20 = vpop.trf.xlu0 }
 0x8a3   : > { %3532 = vmatmul.mubr.msk.bf16.vlgmr.msra.gmra.mrb[20].mxu1 %vm4919_vm0, %v3322_v20 }
 0x976   : > { %v3371_v8 = vpop.f32.mrb[20].mxu1 }
 0x977   : > { %v3378_v48 = vmax.f32 %v3371_v8, 0.0  ;;  %v3373_v47 = vpop.f32.mrb[21].mxu1 }
 0x978   : > { %v3379_v16 = vmax.f32 %v3373_v47, 0.0  ;;  %v3375_v13 = vpop.f32.mrb[22].mxu1 }
 0x979   : > { %3380 = vst [vmem:[%s218_s23] sm:$0xff] %v3378_v48  ;;  %v3376_v0 = vpop.f32.mrb[23].mxu1 }
 0x97a   : > { %3381 = vst [vmem:[%s218_s23 + $0x8] sm:$0xff] %v3379_v16 }
 0x97b   : > { %4079 = shalt.err (!%p4076_p3)
}
 0x97c   : > { %s4080_s13 = scalar_lea.hbm %s4853_s6, 256  ;;  %s4084_s15 = scalar_lea.hbm %s4900_s5, 512 }
 0x97d   : > { %p4081_p4 = scmp.ne.s32.totalorder %s4853_s6, %s4080_s13  ;;  %p4085_p9 = scmp.lt.u32.totalorder %s4853_s6, %s4900_s5 }
 0x97e   : > { %p4086_p10 = scmp.lt.u32.totalorder %s4084_s15, %s4080_s13  ;;  %p4088_p12 = scmp.lt.u32.totalorder %s4080_s13, %s4853_s6 }
 0x97f   : > { %p4082_p7 = pnand %p4081_p4, %p4216_p5 }
 0x980   : > { %p4087_p11 = por %p4086_p10, %p4085_p9 }
 0x981   : > { %p4083_p8 = pneg %p4082_p7 }
 0x982   : > { %p4089_p13 = por %p4088_p12, %p4087_p11 }
 0x984   : > { %p4090_p0 = pnand %p4089_p13, %p4083_p8 }
 0x986   : > { %4093 = shalt.err (!%p4090_p0)
}
 0x987   : > { %3795 = dma.vmem_to_hbm [thread:$0]  (%p4216_p5), %s4855_s14, 256, %s4853_s6, %s3383_s22  }
 0x988 PF: > { %p3801_p1 = scmp.ge.s32.totalorder %s4128_s21, 2  ;;  %s3409_s9 = sand.u32 1, %s4116_s18  }
 0x989   : > { %s3410_s23 = scalar_lea.sflag [#allocation3], %s3409_s9 }
 0x98a   : > { %p3798_p2 = pnand %p3801_p1, %p4220_p6 }
 0x98c   : > { %4111 = dma.done.wait (!%p3798_p2), %s3410_s23, 256  }
 0x98d   : > { %4113 = vsyncadd (!%p3798_p2), %s3410_s23, 4294967040  ;;  %p15_p3 = scmp.ge.s32.totalorder %s4203_s24, 4   ;;  %s4920_s18 = smov %s4120_s19 }
 0x98e   : > { %s4921_s19 = smov %s4124_s20  ;;  %s4922_s20 = smov %s4214_s27 }
 0x98f   : > { %s4923_s21 = smov %s4203_s24  ;;  %17 = sbr.rel (!%p15_p3) target bundleno = 3 (0x3), region = 75 }
 0x996   :  { %3415 = vsyncpa [#allocation3], 1 }
 0x997   :  { %3417 = vsyncpa [#allocation3 + $0x1], 1 }

</bundles_post_ra>
